<compile_context>
chip_gen: v5e
topology: v5e:2x2
jax: 0.10.0
libtpu: 0.0.40
codegen_flags: <defaults>
</compile_context>

<pallas_src>
import functools

import jax
import jax.numpy as jnp
from jax.experimental import pallas as pl
from jax.experimental.pallas import tpu as pltpu


def interp_matrix(out_size: int, in_size: int) -> jnp.ndarray:
    """(out_size, in_size) linear-interp matrix, align_corners=True."""
    if in_size == 1:
        return jnp.ones((out_size, 1), jnp.float32)
    i = jnp.arange(out_size, dtype=jnp.float32)
    denom = float(max(out_size - 1, 1))
    src = i * (in_size - 1) / denom
    i0 = jnp.clip(jnp.floor(src).astype(jnp.int32), 0, in_size - 2)
    frac = src - i0.astype(jnp.float32)
    cols = jnp.arange(in_size)[None, :]
    a = (cols == i0[:, None]).astype(jnp.float32) * (1.0 - frac)[:, None]
    b = (cols == (i0 + 1)[:, None]).astype(jnp.float32) * frac[:, None]
    return a + b


def _upscale_kernel(xpad_ref, w1_ref, b1_ref, w2_ref, b2_ref, ah_ref, awT_ref,
                    o_ref, hpad_ref, *, NB, H, W, Cin, Ch):
    M = NB * H * W
    OW = 16 * W

    # ---- conv1 (3x3, pad=1) + ReLU : single im2col matmul -------------------
    # taps ordered (dy, dx) row-major -> matches w1.reshape(9*Cin, Ch).
    p1 = jnp.concatenate(
        [xpad_ref[:, dy:dy + H, dx:dx + W, :].reshape(M, Cin)
         for dy in range(3) for dx in range(3)], axis=1)          # (M, 9*Cin)
    hidden = jnp.maximum(
        jnp.dot(p1, w1_ref[...], preferred_element_type=jnp.float32)
        + b1_ref[...], 0.0)                                       # (M, Ch)

    # ---- stage hidden with a 1-pixel zero halo (tiny VMEM scratch) ----------
    hpad_ref[...] = jnp.zeros(hpad_ref.shape, hpad_ref.dtype)
    hpad_ref[:, 1:H + 1, 1:W + 1, :] = hidden.reshape(NB, H, W, Ch)

    # ---- conv2 (3x3, pad=1) -> 2 flow channels : single im2col matmul -------
    p2 = jnp.concatenate(
        [hpad_ref[:, dy:dy + H, dx:dx + W, :].reshape(M, Ch)
         for dy in range(3) for dx in range(3)], axis=1)          # (M, 9*Ch)
    flow = (jnp.dot(p2, w2_ref[...], preferred_element_type=jnp.float32)
            + b2_ref[...])                                        # (M, 2)
    flow4 = flow.reshape(NB, H, W, 2)

    # ---- 16x bilinear upsample (align_corners=True); 16 folded into ah ------
    ah = ah_ref[...]      # (OH, H), already scaled by 16
    awT = awT_ref[...]    # (W, OW)
    for c in range(2):
        # W-interp: all NB samples of this channel in one matmul.
        fc = flow4[:, :, :, c].reshape(NB * H, W)                 # (NB*H, W)
        tmp = jnp.dot(fc, awT, preferred_element_type=jnp.float32)  # (NB*H, OW)
        tmp3 = tmp.reshape(NB, H, OW)
        # H-interp: per sample so the result writes straight into the
        # lane-dense (OH, OW) output window (no post-matmul transpose).
        for n in range(NB):
            o_ref[n, c, :, :] = jnp.dot(ah, tmp3[n],
                                        preferred_element_type=jnp.float32)


def upscale_interpolate(x_nchw, w1, b1, w2, b2, *, block_n=2):
    """x_nchw: (N, Cin, H, W) f32; w1: (3,3,Cin,Ch) HWIO; w2: (3,3,Ch,2) HWIO."""
    N, Cin, H, W = x_nchw.shape
    Ch = w1.shape[3]
    OH, OW = 16 * H, 16 * W

    NB = min(block_n, N)
    if N % NB != 0:
        NB = 1

    # glue: layout + 1-px halo + im2col weights + separable interp matrices.
    x_nhwc = jnp.transpose(x_nchw, (0, 2, 3, 1)).astype(jnp.float32)
    x_pad = jnp.pad(x_nhwc, ((0, 0), (1, 1), (1, 1), (0, 0)))
    w1_mat = w1.astype(jnp.float32).reshape(9 * Cin, Ch)   # (dy,dx,ci) -> rows
    w2_mat = w2.astype(jnp.float32).reshape(9 * Ch, 2)
    b1r = b1.reshape(1, Ch).astype(jnp.float32)
    b2r = b2.reshape(1, 2).astype(jnp.float32)
    ah16 = 16.0 * interp_matrix(OH, H)                      # (OH, H), x16 folded in
    awT = interp_matrix(OW, W).T                            # (W, OW)

    kernel = functools.partial(_upscale_kernel, NB=NB, H=H, W=W, Cin=Cin, Ch=Ch)

    return pl.pallas_call(
        kernel,
        out_shape=jax.ShapeDtypeStruct((N, 2, OH, OW), jnp.float32),
        grid_spec=pltpu.PrefetchScalarGridSpec(
            num_scalar_prefetch=0,
            grid=(N // NB,),
            in_specs=[
                pl.BlockSpec((NB, H + 2, W + 2, Cin), lambda i: (i, 0, 0, 0)),
                pl.BlockSpec((9 * Cin, Ch), lambda i: (0, 0)),
                pl.BlockSpec((1, Ch), lambda i: (0, 0)),
                pl.BlockSpec((9 * Ch, 2), lambda i: (0, 0)),
                pl.BlockSpec((1, 2), lambda i: (0, 0)),
                pl.BlockSpec((OH, H), lambda i: (0, 0)),
                pl.BlockSpec((W, OW), lambda i: (0, 0)),
            ],
            out_specs=pl.BlockSpec((NB, 2, OH, OW), lambda i: (i, 0, 0, 0)),
            scratch_shapes=[pltpu.VMEM((NB, H + 2, W + 2, Ch), jnp.float32)],
        ),
        compiler_params=pltpu.CompilerParams(
            dimension_semantics=("parallel",)),   # batch axis is independent
    )(x_pad, w1_mat, b1r, w2_mat, b2r, ah16, awT)


def reference(x_nchw, w1, b1, w2, b2):
    """Pure-JAX reference (lax conv + separable align_corners interp)."""
    N, Cin, H, W = x_nchw.shape
    w1_oihw = jnp.transpose(w1, (3, 2, 0, 1))
    w2_oihw = jnp.transpose(w2, (3, 2, 0, 1))
    dn = ("NCHW", "OIHW", "NCHW")
    h = jax.lax.conv_general_dilated(x_nchw, w1_oihw, (1, 1), "SAME",
                                     dimension_numbers=dn)
    h = jnp.maximum(h + b1[None, :, None, None], 0.0)
    flow = jax.lax.conv_general_dilated(h, w2_oihw, (1, 1), "SAME",
                                        dimension_numbers=dn)
    flow = flow + b2[None, :, None, None]
    ah = interp_matrix(16 * H, H)
    aw = interp_matrix(16 * W, W)
    up = jnp.einsum("oh,nchw,pw->ncop", ah, flow, aw)
    return 16.0 * up


if __name__ == "__main__":
    # small shapes consistent with the module (input_dim -> hidden_dim -> 2)
    N, Cin, Ch, H, W = 4, 8, 16, 8, 8

    key = jax.random.PRNGKey(0)
    kx, k1, kb1, k2, kb2 = jax.random.split(key, 5)
    x = jax.random.normal(kx, (N, Cin, H, W), jnp.float32)
    w1 = 0.1 * jax.random.normal(k1, (3, 3, Cin, Ch), jnp.float32)   # HWIO
    b1 = 0.1 * jax.random.normal(kb1, (Ch,), jnp.float32)
    w2 = 0.1 * jax.random.normal(k2, (3, 3, Ch, 2), jnp.float32)     # HWIO
    b2 = 0.1 * jax.random.normal(kb2, (2,), jnp.float32)

    out = upscale_interpolate(x, w1, b1, w2, b2)
    out = jax.block_until_ready(out)

    ref = jax.block_until_ready(reference(x, w1, b1, w2, b2))
    assert out.shape == (N, 2, 16 * H, 16 * W), out.shape
    if not jnp.allclose(out, ref, atol=2e-3, rtol=2e-3):
        raise AssertionError(
            f"mismatch vs reference, max abs diff = {jnp.max(jnp.abs(out - ref))}")

    print("KERNEL_OK")
</pallas_src>

<mosaic_0001>
module attributes {stable_mosaic.version = 11 : i64} {
  func.func @_upscale_kernel(%arg0: i32, %arg1: memref<2x10x10x8xf32, #tpu.memory_space<vmem>>, %arg2: memref<72x16xf32, #tpu.memory_space<vmem>>, %arg3: memref<1x16xf32, #tpu.memory_space<vmem>>, %arg4: memref<144x2xf32, #tpu.memory_space<vmem>>, %arg5: memref<1x2xf32, #tpu.memory_space<vmem>>, %arg6: memref<128x8xf32, #tpu.memory_space<vmem>>, %arg7: memref<8x128xf32, #tpu.memory_space<vmem>>, %arg8: memref<2x2x128x128xf32, #tpu.memory_space<vmem>>, %arg9: memref<2x10x10x16xf32, #tpu.memory_space<vmem>>) attributes {dimension_semantics = [#tpu.dimension_semantics<parallel>], iteration_bounds = array<i64: 2>, scalar_prefetch = 0 : i64, scratch_operands = 1 : i64, tpu.core_type = #tpu.core_type<tc>, window_params = [{transform_indices = @transform_0, window_bounds = array<i64: 2, 10, 10, 8>}, {pipeline_mode = #tpu.pipeline_mode<synchronous>, transform_indices = @transform_1, window_bounds = array<i64: 72, 16>}, {pipeline_mode = #tpu.pipeline_mode<synchronous>, transform_indices = @transform_2, window_bounds = array<i64: 1, 16>}, {pipeline_mode = #tpu.pipeline_mode<synchronous>, transform_indices = @transform_3, window_bounds = array<i64: 144, 2>}, {pipeline_mode = #tpu.pipeline_mode<synchronous>, transform_indices = @transform_4, window_bounds = array<i64: 1, 2>}, {pipeline_mode = #tpu.pipeline_mode<synchronous>, transform_indices = @transform_5, window_bounds = array<i64: 128, 8>}, {pipeline_mode = #tpu.pipeline_mode<synchronous>, transform_indices = @transform_6, window_bounds = array<i64: 8, 128>}, {transform_indices = @transform_7, window_bounds = array<i64: 2, 2, 128, 128>}]} {
    %c0 = arith.constant 0 : index
    %c0_0 = arith.constant 0 : index
    %c0_1 = arith.constant 0 : index
    %c0_2 = arith.constant 0 : index
    %0 = vector.load %arg1[%c0, %c0_0, %c0_1, %c0_2] : memref<2x10x10x8xf32, #tpu.memory_space<vmem>>, vector<2x8x8x8xf32>
    %1 = vector.shape_cast %0 : vector<2x8x8x8xf32> to vector<128x8xf32>
    %c0_3 = arith.constant 0 : index
    %c0_4 = arith.constant 0 : index
    %c1 = arith.constant 1 : index
    %c0_5 = arith.constant 0 : index
    %2 = vector.load %arg1[%c0_3, %c0_4, %c1, %c0_5] : memref<2x10x10x8xf32, #tpu.memory_space<vmem>>, vector<2x8x8x8xf32>
    %3 = vector.shape_cast %2 : vector<2x8x8x8xf32> to vector<128x8xf32>
    %c0_6 = arith.constant 0 : index
    %c0_7 = arith.constant 0 : index
    %c2 = arith.constant 2 : index
    %c0_8 = arith.constant 0 : index
    %4 = vector.load %arg1[%c0_6, %c0_7, %c2, %c0_8] : memref<2x10x10x8xf32, #tpu.memory_space<vmem>>, vector<2x8x8x8xf32>
    %5 = vector.shape_cast %4 : vector<2x8x8x8xf32> to vector<128x8xf32>
    %c0_9 = arith.constant 0 : index
    %c1_10 = arith.constant 1 : index
    %c0_11 = arith.constant 0 : index
    %c0_12 = arith.constant 0 : index
    %6 = vector.load %arg1[%c0_9, %c1_10, %c0_11, %c0_12] : memref<2x10x10x8xf32, #tpu.memory_space<vmem>>, vector<2x8x8x8xf32>
    %7 = vector.shape_cast %6 : vector<2x8x8x8xf32> to vector<128x8xf32>
    %c0_13 = arith.constant 0 : index
    %c1_14 = arith.constant 1 : index
    %c1_15 = arith.constant 1 : index
    %c0_16 = arith.constant 0 : index
    %8 = vector.load %arg1[%c0_13, %c1_14, %c1_15, %c0_16] : memref<2x10x10x8xf32, #tpu.memory_space<vmem>>, vector<2x8x8x8xf32>
    %9 = vector.shape_cast %8 : vector<2x8x8x8xf32> to vector<128x8xf32>
    %c0_17 = arith.constant 0 : index
    %c1_18 = arith.constant 1 : index
    %c2_19 = arith.constant 2 : index
    %c0_20 = arith.constant 0 : index
    %10 = vector.load %arg1[%c0_17, %c1_18, %c2_19, %c0_20] : memref<2x10x10x8xf32, #tpu.memory_space<vmem>>, vector<2x8x8x8xf32>
    %11 = vector.shape_cast %10 : vector<2x8x8x8xf32> to vector<128x8xf32>
    %c0_21 = arith.constant 0 : index
    %c2_22 = arith.constant 2 : index
    %c0_23 = arith.constant 0 : index
    %c0_24 = arith.constant 0 : index
    %12 = vector.load %arg1[%c0_21, %c2_22, %c0_23, %c0_24] : memref<2x10x10x8xf32, #tpu.memory_space<vmem>>, vector<2x8x8x8xf32>
    %13 = vector.shape_cast %12 : vector<2x8x8x8xf32> to vector<128x8xf32>
    %c0_25 = arith.constant 0 : index
    %c2_26 = arith.constant 2 : index
    %c1_27 = arith.constant 1 : index
    %c0_28 = arith.constant 0 : index
    %14 = vector.load %arg1[%c0_25, %c2_26, %c1_27, %c0_28] : memref<2x10x10x8xf32, #tpu.memory_space<vmem>>, vector<2x8x8x8xf32>
    %15 = vector.shape_cast %14 : vector<2x8x8x8xf32> to vector<128x8xf32>
    %c0_29 = arith.constant 0 : index
    %c2_30 = arith.constant 2 : index
    %c2_31 = arith.constant 2 : index
    %c0_32 = arith.constant 0 : index
    %16 = vector.load %arg1[%c0_29, %c2_30, %c2_31, %c0_32] : memref<2x10x10x8xf32, #tpu.memory_space<vmem>>, vector<2x8x8x8xf32>
    %17 = vector.shape_cast %16 : vector<2x8x8x8xf32> to vector<128x8xf32>
    %18 = tpu.concatenate %1, %3, %5, %7, %9, %11, %13, %15, %17 in 1 : vector<128x8xf32>, vector<128x8xf32>, vector<128x8xf32>, vector<128x8xf32>, vector<128x8xf32>, vector<128x8xf32>, vector<128x8xf32>, vector<128x8xf32>, vector<128x8xf32> -> vector<128x72xf32>
    %c0_33 = arith.constant 0 : index
    %c0_34 = arith.constant 0 : index
    %19 = vector.load %arg2[%c0_33, %c0_34] : memref<72x16xf32, #tpu.memory_space<vmem>>, vector<72x16xf32>
    %cst = arith.constant dense<0.000000e+00> : vector<128x16xf32>
    %20 = tpu.matmul %18, %19, %cst {dimension_numbers = #tpu.dot_dimension_numbers<[1], [0], [0], [1], [0, 0, 1, 1], [], []>} : vector<128x72xf32>, vector<72x16xf32>, vector<128x16xf32> -> vector<128x16xf32>
    %c0_35 = arith.constant 0 : index
    %c0_36 = arith.constant 0 : index
    %21 = vector.load %arg3[%c0_35, %c0_36] : memref<1x16xf32, #tpu.memory_space<vmem>>, vector<1x16xf32>
    %22 = vector.broadcast %21 : vector<1x16xf32> to vector<128x16xf32>
    %23 = arith.addf %20, %22 : vector<128x16xf32>
    %cst_37 = arith.constant 0.000000e+00 : f32
    %24 = vector.broadcast %cst_37 : f32 to vector<128x16xf32>
    %25 = arith.maximumf %23, %24 : vector<128x16xf32>
    %cst_38 = arith.constant 0.000000e+00 : f32
    %26 = vector.broadcast %cst_38 : f32 to vector<2x10x10x16xf32>
    %c0_39 = arith.constant 0 : index
    %c0_40 = arith.constant 0 : index
    %c0_41 = arith.constant 0 : index
    %c0_42 = arith.constant 0 : index
    %27 = vector.load %arg9[%c0_39, %c0_40, %c0_41, %c0_42] : memref<2x10x10x16xf32, #tpu.memory_space<vmem>>, vector<2x10x10x16xf32>
    tpu.vector_store %arg9[%c0_39, %c0_40, %c0_41, %c0_42], %26 {strides = array<i32>} : memref<2x10x10x16xf32, #tpu.memory_space<vmem>>, vector<2x10x10x16xf32>,
    %28 = vector.shape_cast %25 : vector<128x16xf32> to vector<2x8x8x16xf32>
    %c0_43 = arith.constant 0 : index
    %c1_44 = arith.constant 1 : index
    %c1_45 = arith.constant 1 : index
    %c0_46 = arith.constant 0 : index
    %29 = vector.load %arg9[%c0_43, %c1_44, %c1_45, %c0_46] : memref<2x10x10x16xf32, #tpu.memory_space<vmem>>, vector<2x8x8x16xf32>
    tpu.vector_store %arg9[%c0_43, %c1_44, %c1_45, %c0_46], %28 {strides = array<i32>} : memref<2x10x10x16xf32, #tpu.memory_space<vmem>>, vector<2x8x8x16xf32>,
    %c0_47 = arith.constant 0 : index
    %c0_48 = arith.constant 0 : index
    %c0_49 = arith.constant 0 : index
    %c0_50 = arith.constant 0 : index
    %30 = vector.load %arg9[%c0_47, %c0_48, %c0_49, %c0_50] : memref<2x10x10x16xf32, #tpu.memory_space<vmem>>, vector<2x8x8x16xf32>
    %31 = vector.shape_cast %30 : vector<2x8x8x16xf32> to vector<128x16xf32>
    %c0_51 = arith.constant 0 : index
    %c0_52 = arith.constant 0 : index
    %c1_53 = arith.constant 1 : index
    %c0_54 = arith.constant 0 : index
    %32 = vector.load %arg9[%c0_51, %c0_52, %c1_53, %c0_54] : memref<2x10x10x16xf32, #tpu.memory_space<vmem>>, vector<2x8x8x16xf32>
    %33 = vector.shape_cast %32 : vector<2x8x8x16xf32> to vector<128x16xf32>
    %c0_55 = arith.constant 0 : index
    %c0_56 = arith.constant 0 : index
    %c2_57 = arith.constant 2 : index
    %c0_58 = arith.constant 0 : index
    %34 = vector.load %arg9[%c0_55, %c0_56, %c2_57, %c0_58] : memref<2x10x10x16xf32, #tpu.memory_space<vmem>>, vector<2x8x8x16xf32>
    %35 = vector.shape_cast %34 : vector<2x8x8x16xf32> to vector<128x16xf32>
    %c0_59 = arith.constant 0 : index
    %c1_60 = arith.constant 1 : index
    %c0_61 = arith.constant 0 : index
    %c0_62 = arith.constant 0 : index
    %36 = vector.load %arg9[%c0_59, %c1_60, %c0_61, %c0_62] : memref<2x10x10x16xf32, #tpu.memory_space<vmem>>, vector<2x8x8x16xf32>
    %37 = vector.shape_cast %36 : vector<2x8x8x16xf32> to vector<128x16xf32>
    %c0_63 = arith.constant 0 : index
    %c1_64 = arith.constant 1 : index
    %c1_65 = arith.constant 1 : index
    %c0_66 = arith.constant 0 : index
    %38 = vector.load %arg9[%c0_63, %c1_64, %c1_65, %c0_66] : memref<2x10x10x16xf32, #tpu.memory_space<vmem>>, vector<2x8x8x16xf32>
    %39 = vector.shape_cast %38 : vector<2x8x8x16xf32> to vector<128x16xf32>
    %c0_67 = arith.constant 0 : index
    %c1_68 = arith.constant 1 : index
    %c2_69 = arith.constant 2 : index
    %c0_70 = arith.constant 0 : index
    %40 = vector.load %arg9[%c0_67, %c1_68, %c2_69, %c0_70] : memref<2x10x10x16xf32, #tpu.memory_space<vmem>>, vector<2x8x8x16xf32>
    %41 = vector.shape_cast %40 : vector<2x8x8x16xf32> to vector<128x16xf32>
    %c0_71 = arith.constant 0 : index
    %c2_72 = arith.constant 2 : index
    %c0_73 = arith.constant 0 : index
    %c0_74 = arith.constant 0 : index
    %42 = vector.load %arg9[%c0_71, %c2_72, %c0_73, %c0_74] : memref<2x10x10x16xf32, #tpu.memory_space<vmem>>, vector<2x8x8x16xf32>
    %43 = vector.shape_cast %42 : vector<2x8x8x16xf32> to vector<128x16xf32>
    %c0_75 = arith.constant 0 : index
    %c2_76 = arith.constant 2 : index
    %c1_77 = arith.constant 1 : index
    %c0_78 = arith.constant 0 : index
    %44 = vector.load %arg9[%c0_75, %c2_76, %c1_77, %c0_78] : memref<2x10x10x16xf32, #tpu.memory_space<vmem>>, vector<2x8x8x16xf32>
    %45 = vector.shape_cast %44 : vector<2x8x8x16xf32> to vector<128x16xf32>
    %c0_79 = arith.constant 0 : index
    %c2_80 = arith.constant 2 : index
    %c2_81 = arith.constant 2 : index
    %c0_82 = arith.constant 0 : index
    %46 = vector.load %arg9[%c0_79, %c2_80, %c2_81, %c0_82] : memref<2x10x10x16xf32, #tpu.memory_space<vmem>>, vector<2x8x8x16xf32>
    %47 = vector.shape_cast %46 : vector<2x8x8x16xf32> to vector<128x16xf32>
    %48 = tpu.concatenate %31, %33, %35, %37, %39, %41, %43, %45, %47 in 1 : vector<128x16xf32>, vector<128x16xf32>, vector<128x16xf32>, vector<128x16xf32>, vector<128x16xf32>, vector<128x16xf32>, vector<128x16xf32>, vector<128x16xf32>, vector<128x16xf32> -> vector<128x144xf32>
    %c0_83 = arith.constant 0 : index
    %c0_84 = arith.constant 0 : index
    %49 = vector.load %arg4[%c0_83, %c0_84] : memref<144x2xf32, #tpu.memory_space<vmem>>, vector<144x2xf32>
    %cst_85 = arith.constant dense<0.000000e+00> : vector<128x2xf32>
    %50 = tpu.matmul %48, %49, %cst_85 {dimension_numbers = #tpu.dot_dimension_numbers<[1], [0], [0], [1], [0, 0, 1, 1], [], []>} : vector<128x144xf32>, vector<144x2xf32>, vector<128x2xf32> -> vector<128x2xf32>
    %c0_86 = arith.constant 0 : index
    %c0_87 = arith.constant 0 : index
    %51 = vector.load %arg5[%c0_86, %c0_87] : memref<1x2xf32, #tpu.memory_space<vmem>>, vector<1x2xf32>
    %52 = vector.broadcast %51 : vector<1x2xf32> to vector<128x2xf32>
    %53 = arith.addf %50, %52 : vector<128x2xf32>
    %54 = vector.shape_cast %53 : vector<128x2xf32> to vector<2x8x8x2xf32>
    %c0_88 = arith.constant 0 : index
    %c0_89 = arith.constant 0 : index
    %55 = vector.load %arg6[%c0_88, %c0_89] : memref<128x8xf32, #tpu.memory_space<vmem>>, vector<128x8xf32>
    %c0_90 = arith.constant 0 : index
    %c0_91 = arith.constant 0 : index
    %56 = vector.load %arg7[%c0_90, %c0_91] : memref<8x128xf32, #tpu.memory_space<vmem>>, vector<8x128xf32>
    %57 = vector.extract_strided_slice %54 {offsets = [0, 0, 0, 0], sizes = [2, 8, 8, 1], strides = [1, 1, 1, 1]} : vector<2x8x8x2xf32> to vector<2x8x8x1xf32>
    %58 = vector.shape_cast %57 : vector<2x8x8x1xf32> to vector<2x8x8xf32>
    %59 = vector.shape_cast %58 : vector<2x8x8xf32> to vector<16x8xf32>
    %cst_92 = arith.constant dense<0.000000e+00> : vector<16x128xf32>
    %60 = tpu.matmul %59, %56, %cst_92 {dimension_numbers = #tpu.dot_dimension_numbers<[1], [0], [0], [1], [0, 0, 1, 1], [], []>} : vector<16x8xf32>, vector<8x128xf32>, vector<16x128xf32> -> vector<16x128xf32>
    %61 = vector.shape_cast %60 : vector<16x128xf32> to vector<2x8x128xf32>
    %62 = vector.extract_strided_slice %61 {offsets = [0, 0, 0], sizes = [1, 8, 128], strides = [1, 1, 1]} : vector<2x8x128xf32> to vector<1x8x128xf32>
    %63 = vector.shape_cast %62 : vector<1x8x128xf32> to vector<8x128xf32>
    %cst_93 = arith.constant dense<0.000000e+00> : vector<128x128xf32>
    %64 = tpu.matmul %55, %63, %cst_93 {dimension_numbers = #tpu.dot_dimension_numbers<[1], [0], [0], [1], [0, 0, 1, 1], [], []>} : vector<128x8xf32>, vector<8x128xf32>, vector<128x128xf32> -> vector<128x128xf32>
    %c0_94 = arith.constant 0 : index
    %c0_95 = arith.constant 0 : index
    %c0_96 = arith.constant 0 : index
    %c0_97 = arith.constant 0 : index
    %65 = vector.load %arg8[%c0_94, %c0_95, %c0_96, %c0_97] : memref<2x2x128x128xf32, #tpu.memory_space<vmem>>, vector<1x1x128x128xf32>
    %66 = vector.shape_cast %65 : vector<1x1x128x128xf32> to vector<128x128xf32>
    %67 = vector.shape_cast %64 : vector<128x128xf32> to vector<1x1x128x128xf32>
    tpu.vector_store %arg8[%c0_94, %c0_95, %c0_96, %c0_97], %67 {strides = array<i32>} : memref<2x2x128x128xf32, #tpu.memory_space<vmem>>, vector<1x1x128x128xf32>,
    %68 = vector.extract_strided_slice %61 {offsets = [1, 0, 0], sizes = [1, 8, 128], strides = [1, 1, 1]} : vector<2x8x128xf32> to vector<1x8x128xf32>
    %69 = vector.shape_cast %68 : vector<1x8x128xf32> to vector<8x128xf32>
    %cst_98 = arith.constant dense<0.000000e+00> : vector<128x128xf32>
    %70 = tpu.matmul %55, %69, %cst_98 {dimension_numbers = #tpu.dot_dimension_numbers<[1], [0], [0], [1], [0, 0, 1, 1], [], []>} : vector<128x8xf32>, vector<8x128xf32>, vector<128x128xf32> -> vector<128x128xf32>
    %c1_99 = arith.constant 1 : index
    %c0_100 = arith.constant 0 : index
    %c0_101 = arith.constant 0 : index
    %c0_102 = arith.constant 0 : index
    %71 = vector.load %arg8[%c1_99, %c0_100, %c0_101, %c0_102] : memref<2x2x128x128xf32, #tpu.memory_space<vmem>>, vector<1x1x128x128xf32>
    %72 = vector.shape_cast %71 : vector<1x1x128x128xf32> to vector<128x128xf32>
    %73 = vector.shape_cast %70 : vector<128x128xf32> to vector<1x1x128x128xf32>
    tpu.vector_store %arg8[%c1_99, %c0_100, %c0_101, %c0_102], %73 {strides = array<i32>} : memref<2x2x128x128xf32, #tpu.memory_space<vmem>>, vector<1x1x128x128xf32>,
    %74 = vector.extract_strided_slice %54 {offsets = [0, 0, 0, 1], sizes = [2, 8, 8, 1], strides = [1, 1, 1, 1]} : vector<2x8x8x2xf32> to vector<2x8x8x1xf32>
    %75 = vector.shape_cast %74 : vector<2x8x8x1xf32> to vector<2x8x8xf32>
    %76 = vector.shape_cast %75 : vector<2x8x8xf32> to vector<16x8xf32>
    %cst_103 = arith.constant dense<0.000000e+00> : vector<16x128xf32>
    %77 = tpu.matmul %76, %56, %cst_103 {dimension_numbers = #tpu.dot_dimension_numbers<[1], [0], [0], [1], [0, 0, 1, 1], [], []>} : vector<16x8xf32>, vector<8x128xf32>, vector<16x128xf32> -> vector<16x128xf32>
    %78 = vector.shape_cast %77 : vector<16x128xf32> to vector<2x8x128xf32>
    %79 = vector.extract_strided_slice %78 {offsets = [0, 0, 0], sizes = [1, 8, 128], strides = [1, 1, 1]} : vector<2x8x128xf32> to vector<1x8x128xf32>
    %80 = vector.shape_cast %79 : vector<1x8x128xf32> to vector<8x128xf32>
    %cst_104 = arith.constant dense<0.000000e+00> : vector<128x128xf32>
    %81 = tpu.matmul %55, %80, %cst_104 {dimension_numbers = #tpu.dot_dimension_numbers<[1], [0], [0], [1], [0, 0, 1, 1], [], []>} : vector<128x8xf32>, vector<8x128xf32>, vector<128x128xf32> -> vector<128x128xf32>
    %c0_105 = arith.constant 0 : index
    %c1_106 = arith.constant 1 : index
    %c0_107 = arith.constant 0 : index
    %c0_108 = arith.constant 0 : index
    %82 = vector.load %arg8[%c0_105, %c1_106, %c0_107, %c0_108] : memref<2x2x128x128xf32, #tpu.memory_space<vmem>>, vector<1x1x128x128xf32>
    %83 = vector.shape_cast %82 : vector<1x1x128x128xf32> to vector<128x128xf32>
    %84 = vector.shape_cast %81 : vector<128x128xf32> to vector<1x1x128x128xf32>
    tpu.vector_store %arg8[%c0_105, %c1_106, %c0_107, %c0_108], %84 {strides = array<i32>} : memref<2x2x128x128xf32, #tpu.memory_space<vmem>>, vector<1x1x128x128xf32>,
    %85 = vector.extract_strided_slice %78 {offsets = [1, 0, 0], sizes = [1, 8, 128], strides = [1, 1, 1]} : vector<2x8x128xf32> to vector<1x8x128xf32>
    %86 = vector.shape_cast %85 : vector<1x8x128xf32> to vector<8x128xf32>
    %cst_109 = arith.constant dense<0.000000e+00> : vector<128x128xf32>
    %87 = tpu.matmul %55, %86, %cst_109 {dimension_numbers = #tpu.dot_dimension_numbers<[1], [0], [0], [1], [0, 0, 1, 1], [], []>} : vector<128x8xf32>, vector<8x128xf32>, vector<128x128xf32> -> vector<128x128xf32>
    %c1_110 = arith.constant 1 : index
    %c1_111 = arith.constant 1 : index
    %c0_112 = arith.constant 0 : index
    %c0_113 = arith.constant 0 : index
    %88 = vector.load %arg8[%c1_110, %c1_111, %c0_112, %c0_113] : memref<2x2x128x128xf32, #tpu.memory_space<vmem>>, vector<1x1x128x128xf32>
    %89 = vector.shape_cast %88 : vector<1x1x128x128xf32> to vector<128x128xf32>
    %90 = vector.shape_cast %87 : vector<128x128xf32> to vector<1x1x128x128xf32>
    tpu.vector_store %arg8[%c1_110, %c1_111, %c0_112, %c0_113], %90 {strides = array<i32>} : memref<2x2x128x128xf32, #tpu.memory_space<vmem>>, vector<1x1x128x128xf32>,
    return
  }
  func.func @transform_0(%arg0: i32) -> (i32, i32, i32, i32) {
    %c0_i32 = arith.constant 0 : i32
    %c0_i32_0 = arith.constant 0 : i32
    %c0_i32_1 = arith.constant 0 : i32
    %c0_i32_2 = arith.constant 0 : i32
    return %arg0, %c0_i32, %c0_i32_0, %c0_i32_1 : i32, i32, i32, i32
  }
  func.func @transform_1(%arg0: i32) -> (i32, i32) {
    %c0_i32 = arith.constant 0 : i32
    %c0_i32_0 = arith.constant 0 : i32
    %c0_i32_1 = arith.constant 0 : i32
    return %c0_i32, %c0_i32_0 : i32, i32
  }
  func.func @transform_2(%arg0: i32) -> (i32, i32) {
    %c0_i32 = arith.constant 0 : i32
    %c0_i32_0 = arith.constant 0 : i32
    %c0_i32_1 = arith.constant 0 : i32
    return %c0_i32, %c0_i32_0 : i32, i32
  }
  func.func @transform_3(%arg0: i32) -> (i32, i32) {
    %c0_i32 = arith.constant 0 : i32
    %c0_i32_0 = arith.constant 0 : i32
    %c0_i32_1 = arith.constant 0 : i32
    return %c0_i32, %c0_i32_0 : i32, i32
  }
  func.func @transform_4(%arg0: i32) -> (i32, i32) {
    %c0_i32 = arith.constant 0 : i32
    %c0_i32_0 = arith.constant 0 : i32
    %c0_i32_1 = arith.constant 0 : i32
    return %c0_i32, %c0_i32_0 : i32, i32
  }
  func.func @transform_5(%arg0: i32) -> (i32, i32) {
    %c0_i32 = arith.constant 0 : i32
    %c0_i32_0 = arith.constant 0 : i32
    %c0_i32_1 = arith.constant 0 : i32
    return %c0_i32, %c0_i32_0 : i32, i32
  }
  func.func @transform_6(%arg0: i32) -> (i32, i32) {
    %c0_i32 = arith.constant 0 : i32
    %c0_i32_0 = arith.constant 0 : i32
    %c0_i32_1 = arith.constant 0 : i32
    return %c0_i32, %c0_i32_0 : i32, i32
  }
  func.func @transform_7(%arg0: i32) -> (i32, i32, i32, i32) {
    %c0_i32 = arith.constant 0 : i32
    %c0_i32_0 = arith.constant 0 : i32
    %c0_i32_1 = arith.constant 0 : i32
    %c0_i32_2 = arith.constant 0 : i32
    return %arg0, %c0_i32, %c0_i32_0, %c0_i32_1 : i32, i32, i32, i32
  }
}

</mosaic_0001>

<bundles_post_ra>
// kernel: tpu_custom_call.1
= control target key start
LH: loop header
LB: loop body
LE: loop exit
PB: predicated region body
PF: predicated region fallthrough
CT: control target
= control target key end

     0   :  { %12 = vsyncpa [#allocation4], 0  ;;  %s5081_s0 = inlined_call_operand.vmem [shape: f32[4,10,10,8], index: 0, kind: input, shape index: {}]   ;;  %s5082_s1 = inlined_call_operand.vmem [shape: f32[72,16], index: 1, kind: input, shape index: {}]   ;;  %s5083_s2 = inlined_call_operand.vmem [shape: f32[1,16], index: 2, kind: input, shape index: {}]   ;;  %s5084_s3 = inlined_call_operand.vmem [shape: f32[144,2], index: 3, kind: input, shape index: {}]   ;;  %s5085_s4 = inlined_call_operand.vmem [shape: f32[1,2], index: 4, kind: input, shape index: {}]   ;;  %s5086_s5 = inlined_call_operand.vmem [shape: f32[128,8], index: 5, kind: input, shape index: {}]   ;;  %s5087_s6 = inlined_call_operand.vmem [shape: f32[8,128], index: 6, kind: input, shape index: {}]   ;;  %s5088_s7 = inlined_call_operand.hbm [shape: f32[4,2,128,128], index: 7, kind: output, shape index: {}]  }
   0x1   :  { %14 = vsyncpa [#allocation4 + $0x1], 0  ;;  %s3641_s24 = smov 0   ;;  %s3643_s25 = smov 0  }
   0x2   :  { %s3645_s26 = smov 0   ;;  %s3647_s27 = smov 0  }
   0x3 LB: > { %s3662_s28 = sadd.s32 4294967295, %s3584_s27   ;;  %s2892_s29 = sadd.s32 4294967294, %s3584_s27   ;;  %s3584_s27 = sphi %s3647_s27, %s5103_s27   ;;  %s3580_s26 = sphi %s3645_s26, %s5102_s26   ;;  %s3576_s25 = sphi %s3643_s25, %s5101_s25   ;;  %s3572_s24 = sphi %s3641_s24, %s5100_s24  }
   0x4   : > { %s3666_s30 = sadd.s32 1, %s3584_s27   ;;  %s179_s8 = sadd.s32 1, %s3580_s26 }
   0x5   : > { %s176_s9 = ssub.s32 %s3584_s27, %s3666_s30  ;;  %p189_p0 = scmp.ne.s32.totalorder %s3580_s26, %s3576_s25 }
   0x6   : > { %p177_p1 = scmp.eq.s32.totalorder %s176_s9, 0  ;;  %p190_p2 = scmp.eq.s32.totalorder %s3662_s28, 1 }
   0x7   : > { %p195_p3 = scmp.ne.s32.totalorder %s3576_s25, %s3572_s24  ;;  %p196_p4 = scmp.eq.s32.totalorder %s2892_s29, 1 }
   0x8   : > { %s3677_s10 = scalar_select %p177_p1, %s3580_s26, %s179_s8  }
   0x9   : > { %p3679_p5 = por %p190_p2, %p189_p0  ;;  %p3683_p6 = por %p196_p4, %p195_p3 }
   0xa   : > { %p2895_p7 = scmp.ge.s32.totalorder %s3584_s27, 1  ;;  %p242_p8 = scmp.lt.s32.totalorder %s3584_s27, 3 }
   0xc   : > { %p243_p9 = pnand %p2895_p7, %p242_p8 }
   0xd   : > { %s2897_s13 = sshll.u32 (!%p243_p9), %s3662_s28, 1  ;;  %s5089_s18 = smov (!%p243_p9), 40  }
   0xe   : > { %246 = sbr.rel (%p243_p9) target bundleno = 1388 (0x56c), region = 48  ;;  %p276_p10 = scmp.lt.s32.totalorder (!%p243_p9), %s2897_s13, 3 }
   0xf   : > { %s5091_s19 = smov (!%p243_p9), 24   ;;  %s3588_s20 = smov (!%p243_p9), 8  }
  0x10   : > { %s3589_s21 = smov (!%p243_p9), 48   ;;  %s5093_s22 = smov (!%p243_p9), 32  }
  0x11   : > { %s3591_s23 = smov (!%p243_p9), 16   ;;  %s3592_s29 = smov (!%p243_p9), 64  }
  0x12   : > { %s3593_s8 = smov (!%p243_p9), 56   ;;  %s5097_s9 = smov (!%p243_p9), 40  }
  0x13   : > { %s5105_s13 = smov (!%p276_p10, %s2897_s13), 3  ;;  %v1085_v17 = vld [vmem:[%s5082_s1 + $0x40] sm:$0xff]  ;;  %v1084_v18 = vld [vmem:[%s5082_s1 + $0x38] sm:$0xff]  ;;  %v1083_v19 = vld [vmem:[%s5082_s1 + $0x30] sm:$0xff]  ;;  %vm941_vm0 = vcmask 64512   ;;  %vm958_vm1 = vcmask 130048  }
  0x14   : > { %s3170_s14 = smul.u32 160, %s5105_s13  ;;  %1146 = vmatpush.msra.mxu0 %v1085_v17  ;;  %v1082_v20 = vld [vmem:[%s5082_s1 + $0x28] sm:$0xff]  ;;  %v1081_v22 = vld [vmem:[%s5082_s1 + $0x20] sm:$0xff]  ;;  %v1080_v25 = vld [vmem:[%s5082_s1 + $0x18] sm:$0xff]  ;;  %vm975_vm2 = vcmask 195584   ;;  %vm992_vm3 = vcmask 261120  }
  0x15   : > { %v1079_v26 = vld [vmem:[%s5082_s1 + $0x10] sm:$0xff]  ;;  %v1078_v27 = vld [vmem:[%s5082_s1 + $0x8] sm:$0xff]  ;;  %v1077_v29 = vld [vmem:[%s5082_s1] sm:$0xff]  ;;  %vm1009_vm4 = vcmask 326656   ;;  %vm1026_vm5 = vcmask 392192   ;;  %vm1043_vm6 = vcmask 457728  }
  0x16   : > { %s3693_s17 = scalar_lea.vmem %s5081_s0, %s3170_s14  ;;  %1147 = vmatpush.msra.mxu0 %v1084_v18  ;;  %vm1060_vm7 = vcmask 523264   ;;  %vm1090_vm8 = vcmask 588800   ;;  %vm1221_vm9 = vcmask 123904   ;;  %vm1935_vm10 = vcmask 654336   ;;  %s3542_s15 = scalar_lea.hbm %s5088_s7, 1024 }
  0x17   : > { %v2931_v0 = vld [vmem:[%s3693_s17 + $0x12] sm:$0xff]  ;;  %v299_v2 = vld [vmem:[%s3693_s17 + $0x1] sm:$0xff]  ;;  %vm1952_vm11 = vcmask 785408   ;;  %vm1969_vm12 = vcmask 916480   ;;  %vm2285_vm13 = vcmask 1041409   ;;  %vm2287_vm14 = vcmask 1042434  }
  0x18   : > { %v3697_v1 = vld [vmem:[%s3693_s17 + $0x10] sm:$0xff]  ;;  %701 = vrot.lane.b32.xlu2 %v2931_v0, %s5089_s18  ;;  %445 = vrot.lane.b32.xlu0 %v299_v2, %s3588_s20  ;;  %v3705_v3 = vld [vmem:[%s3693_s17 + $0x20] sm:$0xff]  ;;  %vm2289_vm15 = vcmask 1043459  }
  0x19   : > { %573 = vrot.lane.b32.xlu1 %v3697_v1, %s5091_s19  ;;  %v2915_v4 = vld [vmem:[%s3693_s17 + $0x11] sm:$0xff]  ;;  %v315_v5 = vld [vmem:[%s3693_s17 + $0x2] sm:$0xff]  ;;  %1148 = vmatpush.msra.mxu0 %v1083_v19 }
  0x1a   : > { %v2979_v6 = vld [vmem:[%s3693_s17 + $0x22] sm:$0xff]  ;;  %v3723_v8 = vld [vmem:[%s3693_s17 + $0x30] sm:$0xff] }
  0x1b   : > { %v2963_v7 = vld [vmem:[%s3693_s17 + $0x21] sm:$0xff]  ;;  %v2964_v9 = vld [vmem:[%s3693_s17 + $0x31] sm:$0xff]  ;;  %1149 = vmatpush.msra.mxu0 %v1082_v20 }
  0x1c   : > { %v2980_v10 = vld [vmem:[%s3693_s17 + $0x32] sm:$0xff]  ;;  %v2965_v11 = vld [vmem:[%s3693_s17 + $0x41] sm:$0xff] }
  0x1d   : > { %v2981_v12 = vld [vmem:[%s3693_s17 + $0x42] sm:$0xff]  ;;  %v3752_v14 = vld [vmem:[%s3693_s17 + $0x50] sm:$0xff]  ;;  %1150 = vmatpush.msra.mxu0 %v1081_v22 }
  0x1e   : > { %v3741_v13 = vld [vmem:[%s3693_s17 + $0x40] sm:$0xff]  ;;  %v2982_v15 = vld [vmem:[%s3693_s17 + $0x52] sm:$0xff] }
  0x1f   : > { %v2966_v16 = vld [vmem:[%s3693_s17 + $0x51] sm:$0xff]  ;;  %v3783_v23 = vld [vmem:[%s3693_s17 + $0x60] sm:$0xff]  ;;  %1151 = vmatpush.msra.mxu0 %v1080_v25 }
  0x20   : > { %765 = vrot.lane.b32.xlu2 %v3705_v3, %s3589_s21  ;;  %509 = vrot.lane.b32.xlu0 %v315_v5, %s3591_s23  ;;  %v2967_v24 = vld [vmem:[%s3693_s17 + $0x61] sm:$0xff]  ;;  %v2968_v35 = vld [vmem:[%s3693_s17 + $0x71] sm:$0xff] }
  0x21   : > { %637 = vrot.lane.b32.xlu1 %v2915_v4, %s5093_s22  ;;  %1152 = vmatpush.msra.mxu0 %v1079_v26  ;;  %v2983_v30 = vld [vmem:[%s3693_s17 + $0x62] sm:$0xff]  ;;  %v2984_v36 = vld [vmem:[%s3693_s17 + $0x72] sm:$0xff] }
  0x22   : > { %v3813_v37 = vld [vmem:[%s3693_s17 + $0x70] sm:$0xff]  ;;  %v283_v38 = vld [vmem:[%s3693_s17] sm:$0xff] }
  0x23   : > { %1153 = vmatpush.msra.mxu0 %v1078_v27  ;;  %v2953_v53 = vld [vmem:[%s3693_s17 + $0x80] sm:$0xff] }
  0x24   : > { %v2985_v58 = vld [vmem:[%s3693_s17 + $0x82] sm:$0xff] }
  0x25   : > { %1154 = vmatpush.msra.mxu0 %v1077_v29  ;;  %v2969_v60 = vld [vmem:[%s3693_s17 + $0x81] sm:$0xff] }
  0x26   : > { %v323_v22 = vld [vmem:[%s3693_s17 + $0xa2] sm:$0xff] }
  0x28   : > { %447 = vrot.lane.b32.xlu2 %v2915_v4, %s3588_s20  ;;  %829 = vrot.lane.b32.xlu0 %v2963_v7, %s3593_s8 }
  0x29   : > { %893 = vrot.lane.b32.xlu1 %v2979_v6, %s3592_s29 }
  0x30   : > { %639 = vrot.lane.b32.xlu2 %v2963_v7, %s5093_s22  ;;  %511 = vrot.lane.b32.xlu0 %v2931_v0, %s3591_s23 }
  0x31   : > { %575 = vrot.lane.b32.xlu1 %v3705_v3, %s5091_s19 }
  0x38   : > { %831 = vrot.lane.b32.xlu2 %v2964_v9, %s3593_s8  ;;  %703 = vrot.lane.b32.xlu0 %v2979_v6, %s5089_s18 }
  0x39   : > { %767 = vrot.lane.b32.xlu1 %v3723_v8, %s3589_s21 }
  0x40   : > { %513 = vrot.lane.b32.xlu2 %v2979_v6, %s3591_s23  ;;  %895 = vrot.lane.b32.xlu0 %v2980_v10, %s3592_s29 }
  0x41   : > { %449 = vrot.lane.b32.xlu1 %v2963_v7, %s3588_s20 }
  0x48   : > { %705 = vrot.lane.b32.xlu2 %v2980_v10, %s5089_s18  ;;  %577 = vrot.lane.b32.xlu0 %v3723_v8, %s5091_s19 }
  0x49   : > { %641 = vrot.lane.b32.xlu1 %v2964_v9, %s5093_s22 }
  0x50   : > { %897 = vrot.lane.b32.xlu2 %v2981_v12, %s3592_s29  ;;  %769 = vrot.lane.b32.xlu0 %v3741_v13, %s3589_s21 }
  0x51   : > { %833 = vrot.lane.b32.xlu1 %v2965_v11, %s3593_s8 }
  0x58   : > { %579 = vrot.lane.b32.xlu2 %v3741_v13, %s5091_s19  ;;  %451 = vrot.lane.b32.xlu0 %v2964_v9, %s3588_s20 }
  0x59   : > { %515 = vrot.lane.b32.xlu1 %v2980_v10, %s3591_s23 }
  0x60   : > { %771 = vrot.lane.b32.xlu2 %v3752_v14, %s3589_s21  ;;  %643 = vrot.lane.b32.xlu0 %v2965_v11, %s5093_s22 }
  0x61   : > { %707 = vrot.lane.b32.xlu1 %v2981_v12, %s5089_s18  ;;  %s5099_s18 = smov 24  }
  0x68   : > { %453 = vrot.lane.b32.xlu2 %v2965_v11, %s3588_s20  ;;  %835 = vrot.lane.b32.xlu0 %v2966_v16, %s3593_s8  ;;  %v2954_v11 = vld [vmem:[%s3693_s17 + $0x90] sm:$0xff] }
  0x69   : > { %899 = vrot.lane.b32.xlu1 %v2982_v15, %s3592_s29 }
  0x70   : > { %645 = vrot.lane.b32.xlu2 %v2966_v16, %s5093_s22  ;;  %517 = vrot.lane.b32.xlu0 %v2981_v12, %s3591_s23  ;;  %s5098_s22 = smov 32   ;;  %v2970_v12 = vld [vmem:[%s3693_s17 + $0x91] sm:$0xff] }
  0x71   : > { %581 = vrot.lane.b32.xlu1 %v3752_v14, %s5091_s19 }
  0x72   : > { %v702_v21 = vpop.permute.xlu2 %701 }
  0x78   : > { %837 = vrot.lane.b32.xlu2 %v2967_v24, %s3593_s8  ;;  %709 = vrot.lane.b32.xlu0 %v2982_v15, %s5097_s9 }
  0x79   : > { %773 = vrot.lane.b32.xlu1 %v3783_v23, %s3589_s21 }
  0x7a   : > { %v766_v28 = vpop.permute.xlu2 %765 }
  0x80   : > { %519 = vrot.lane.b32.xlu2 %v2982_v15, %s3591_s23  ;;  %901 = vrot.lane.b32.xlu0 %v2983_v30, %s3592_s29 }
  0x81   : > { %455 = vrot.lane.b32.xlu1 %v2966_v16, %s3588_s20 }
  0x82   : > { %v448_v31 = vpop.permute.xlu2 %447 }
  0x83   : > { %v943_v56 = vsel %vm941_vm0, %v3697_v1, %v448_v31  ;;  %v2923_v31 = vld [vmem:[%s3693_s17 + $0xb1] sm:$0xff] }
  0x88   : > { %711 = vrot.lane.b32.xlu2 %v2983_v30, %s5097_s9  ;;  %583 = vrot.lane.b32.xlu0 %v3783_v23, %s5099_s18 }
  0x89   : > { %647 = vrot.lane.b32.xlu1 %v2967_v24, %s5098_s22 }
  0x8a   : > { %v640_v33 = vpop.permute.xlu2 %639  ;;  %v446_v34 = vpop.permute.xlu0 %445 }
  0x8b   : > { %v574_v32 = vpop.permute.xlu1 %573  ;;  %v942_v41 = vsel %vm941_vm0, %v283_v38, %v446_v34  ;;  %v3878_v34 = vld [vmem:[%s3693_s17 + $0xb0] sm:$0xff] }
  0x90   : > { %903 = vrot.lane.b32.xlu2 %v2984_v36, %s3592_s29  ;;  %775 = vrot.lane.b32.xlu0 %v3813_v37, %s3589_s21 }
  0x91   : > { %839 = vrot.lane.b32.xlu1 %v2968_v35, %s3593_s8 }
  0x92   : > { %v832_v40 = vpop.permute.xlu2 %831  ;;  %v510_v42 = vpop.permute.xlu0 %509 }
  0x93   : > { %v638_v39 = vpop.permute.xlu1 %637  ;;  %v959_v43 = vsel %vm958_vm1, %v942_v41, %v510_v42  ;;  %v3890_v42 = vld [vmem:[%s3693_s17 + $0xc0] sm:$0xff] }
  0x94   : > { %v976_v44 = vsel %vm975_vm2, %v959_v43, %v574_v32  ;;  %v2939_v32 = vld [vmem:[%s3693_s17 + $0xb2] sm:$0xff] }
  0x95   : > { %v993_v45 = vsel %vm992_vm3, %v976_v44, %v638_v39  ;;  %v2971_v39 = vld [vmem:[%s3693_s17 + $0xc1] sm:$0xff] }
  0x96   : > { %v1010_v46 = vsel %vm1009_vm4, %v993_v45, %v702_v21  ;;  %v307_v21 = vld [vmem:[%s3693_s17 + $0xa1] sm:$0xff] }
  0x97   : > { %v1027_v50 = vsel %vm1026_vm5, %v1010_v46, %v766_v28 }
  0x98   : > { %585 = vrot.lane.b32.xlu2 %v3813_v37, %s5099_s18  ;;  %457 = vrot.lane.b32.xlu0 %v2967_v24, %s3588_s20  ;;  %v2986_v24 = vld [vmem:[%s3693_s17 + $0x92] sm:$0xff] }
  0x99   : > { %521 = vrot.lane.b32.xlu1 %v2983_v30, %s3591_s23 }
  0x9a   : > { %v514_v48 = vpop.permute.xlu2 %513  ;;  %v830_v49 = vpop.permute.xlu0 %829 }
  0x9b   : > { %v894_v47 = vpop.permute.xlu1 %893  ;;  %v1044_v51 = vsel %vm1043_vm6, %v1027_v50, %v830_v49 }
  0x9c   : > { %v1061_v52 = vsel %vm1060_vm7, %v1044_v51, %v894_v47 }
  0x9d   : > { %2995 = vmatmul.msk.f32.vlgmr.msra.gmra.mxu0 %vm1090_vm8, %v1061_v52 }
  0xa0   : > { %777 = vrot.lane.b32.xlu2 %v2953_v53, %s3589_s21  ;;  %649 = vrot.lane.b32.xlu0 %v2968_v35, %s5098_s22 }
  0xa1   : > { %713 = vrot.lane.b32.xlu1 %v2984_v36, %s5097_s9 }
  0xa2   : > { %v706_v55 = vpop.permute.xlu2 %705  ;;  %v512_v57 = vpop.permute.xlu0 %511 }
  0xa3   : > { %v576_v54 = vpop.permute.xlu1 %575  ;;  %v960_v59 = vsel %vm958_vm1, %v943_v56, %v512_v57 }
  0xa4   : > { %v977_v61 = vsel %vm975_vm2, %v960_v59, %v576_v54 }
  0xa5   : > { %v994_v1 = vsel %vm992_vm3, %v977_v61, %v640_v33 }
  0xa8   : > { %459 = vrot.lane.b32.xlu2 %v2968_v35, %s3588_s20  ;;  %841 = vrot.lane.b32.xlu0 %v2969_v60, %s3593_s8 }
  0xa9   : > { %905 = vrot.lane.b32.xlu1 %v2985_v58, %s3592_s29 }
  0xaa   : > { %v898_v63 = vpop.permute.xlu2 %897  ;;  %v704_v0 = vpop.permute.xlu0 %703 }
  0xab   : > { %v768_v62 = vpop.permute.xlu1 %767  ;;  %v1011_v2 = vsel %vm1009_vm4, %v994_v1, %v704_v0 }
  0xac   : > { %v1028_v4 = vsel %vm1026_vm5, %v1011_v2, %v768_v62  ;;  %v2972_v62 = vld [vmem:[%s3693_s17 + $0xd1] sm:$0xff] }
  0xad   : > { %v1045_v9 = vsel %vm1043_vm6, %v1028_v4, %v832_v40  ;;  %v2987_v40 = vld [vmem:[%s3693_s17 + $0xc2] sm:$0xff] }
  0xb0   : > { %651 = vrot.lane.b32.xlu2 %v2969_v60, %s5098_s22  ;;  %523 = vrot.lane.b32.xlu0 %v2984_v36, %s3591_s23  ;;  %v2988_v60 = vld [vmem:[%s3693_s17 + $0xd2] sm:$0xff] }
  0xb1   : > { %587 = vrot.lane.b32.xlu1 %v2953_v53, %s5099_s18 }
  0xb2   : > { %v580_v6 = vpop.permute.xlu2 %579  ;;  %v896_v7 = vpop.permute.xlu0 %895 }
  0xb3   : > { %v450_v5 = vpop.permute.xlu1 %449  ;;  %v1062_v10 = vsel %vm1060_vm7, %v1045_v9, %v896_v7 }
  0xb4   : > { %2996 = vmatmul.msk.f32.gmra.mxu0 %vm1090_vm8, %v1062_v10  ;;  %v944_v15 = vsel %vm941_vm0, %v3705_v3, %v450_v5 }
  0xb5   : > { %v961_v19 = vsel %vm958_vm1, %v944_v15, %v514_v48  ;;  %v3940_v15 = vld [vmem:[%s3693_s17 + $0xe1] sm:$0xff] }
  0xb8   : > { %843 = vrot.lane.b32.xlu2 %v2970_v12, %s3593_s8  ;;  %715 = vrot.lane.b32.xlu0 %v2985_v58, %s5097_s9  ;;  %v3937_v12 = vld [vmem:[%s3693_s17 + $0xe0] sm:$0xff] }
  0xb9   : > { %779 = vrot.lane.b32.xlu1 %v2954_v11, %s3589_s21 }
  0xba   : > { %v772_v17 = vpop.permute.xlu2 %771  ;;  %v578_v18 = vpop.permute.xlu0 %577 }
  0xbb   : > { %v642_v16 = vpop.permute.xlu1 %641  ;;  %v978_v20 = vsel %vm975_vm2, %v961_v19, %v578_v18 }
  0xbc   : > { %v995_v25 = vsel %vm992_vm3, %v978_v20, %v642_v16 }
  0xbd   : > { %v1012_v28 = vsel %vm1009_vm4, %v995_v25, %v706_v55  ;;  %v3908_v55 = vld [vmem:[%s3693_s17 + $0xd0] sm:$0xff] }
  0xc0   : > { %525 = vrot.lane.b32.xlu2 %v323_v22, %s3591_s23  ;;  %907 = vrot.lane.b32.xlu0 %v2986_v24, %s3592_s29  ;;  %v2989_v22 = vld [vmem:[%s3693_s17 + $0xe2] sm:$0xff]  ;;  %v3594_v24 = vmov 0.0  }
  0xc1   : > { %461 = vrot.lane.b32.xlu1 %v307_v21, %s3588_s20  ;;  %1223 = vst.msk [vmem:[#allocation2 + $0x10] sm:$0xff] %vm958_vm1, %v3594_v24 }
  0xc2   : > { %v454_v26 = vpop.permute.xlu2 %453  ;;  %v770_v27 = vpop.permute.xlu0 %769  ;;  %1224 = vst.msk [vmem:[#allocation2 + $0x18] sm:$0x3] %vm1221_vm9, %v3594_v24 }
  0xc3   : > { %v834_v3 = vpop.permute.xlu1 %833  ;;  %v1029_v29 = vsel %vm1026_vm5, %v1012_v28, %v770_v27  ;;  %v946_v58 = vsel %vm941_vm0, %v3741_v13, %v454_v26  ;;  %1220 = vst.msk [vmem:[#allocation2] sm:$0xff] %vm958_vm1, %v3594_v24 }
  0xc4   : > { %v1046_v30 = vsel %vm1043_vm6, %v1029_v29, %v834_v3  ;;  %1222 = vst.msk [vmem:[#allocation2 + $0x8] sm:$0x3] %vm1221_vm9, %v3594_v24 }
  0xc5   : > { %v1063_v33 = vsel %vm1060_vm7, %v1046_v30, %v898_v63  ;;  %1225 = vst.msk [vmem:[#allocation2 + $0x20] sm:$0xff] %vm958_vm1, %v3594_v24 }
  0xc6   : > { %2997 = vmatmul.msk.f32.gmra.mxu0 %vm1090_vm8, %v1063_v33  ;;  %1226 = vst.msk [vmem:[#allocation2 + $0x28] sm:$0x3] %vm1221_vm9, %v3594_v24 }
  0xc7   : > { %1227 = vst.msk [vmem:[#allocation2 + $0x30] sm:$0xff] %vm958_vm1, %v3594_v24 }
  0xc8   : > { %717 = vrot.lane.b32.xlu2 %v2939_v32, %s5097_s9  ;;  %589 = vrot.lane.b32.xlu0 %v3878_v34, %s5099_s18  ;;  %1228 = vst.msk [vmem:[#allocation2 + $0x38] sm:$0x3] %vm1221_vm9, %v3594_v24 }
  0xc9   : > { %653 = vrot.lane.b32.xlu1 %v2923_v31, %s5098_s22  ;;  %1229 = vst.msk [vmem:[#allocation2 + $0x40] sm:$0xff] %vm958_vm1, %v3594_v24 }
  0xca   : > { %v646_v36 = vpop.permute.xlu2 %645  ;;  %v452_v38 = vpop.permute.xlu0 %451  ;;  %1230 = vst.msk [vmem:[#allocation2 + $0x48] sm:$0x3] %vm1221_vm9, %v3594_v24 }
  0xcb   : > { %v516_v35 = vpop.permute.xlu1 %515  ;;  %v945_v41 = vsel %vm941_vm0, %v3723_v8, %v452_v38  ;;  %1231 = vst.msk [vmem:[#allocation2 + $0x50] sm:$0xff] %vm958_vm1, %v3594_v24 }
  0xcc   : > { %v962_v43 = vsel %vm958_vm1, %v945_v41, %v516_v35  ;;  %1232 = vst.msk [vmem:[#allocation2 + $0x58] sm:$0x3] %vm1221_vm9, %v3594_v24  ;;  %v4001_v35 = vld [vmem:[%s3693_s17 + $0xf1] sm:$0xff] }
  0xcd   : > { %v979_v47 = vsel %vm975_vm2, %v962_v43, %v580_v6  ;;  %1233 = vst.msk [vmem:[#allocation2 + $0x60] sm:$0xff] %vm958_vm1, %v3594_v24 }
  0xce   : > { %1234 = vst.msk [vmem:[#allocation2 + $0x68] sm:$0x3] %vm1221_vm9, %v3594_v24 }
  0xcf   : > { %1235 = vst.msk [vmem:[#allocation2 + $0x70] sm:$0xff] %vm958_vm1, %v3594_v24 }
  0xd0   : > { %909 = vrot.lane.b32.xlu2 %v2987_v40, %s3592_s29  ;;  %781 = vrot.lane.b32.xlu0 %v3890_v42, %s3589_s21  ;;  %1236 = vst.msk [vmem:[#allocation2 + $0x78] sm:$0x3] %vm1221_vm9, %v3594_v24 }
  0xd1   : > { %845 = vrot.lane.b32.xlu1 %v2971_v39, %s3593_s8  ;;  %1237 = vst.msk [vmem:[#allocation2 + $0x80] sm:$0xff] %vm958_vm1, %v3594_v24 }
  0xd2   : > { %v838_v45 = vpop.permute.xlu2 %837  ;;  %v644_v46 = vpop.permute.xlu0 %643  ;;  %1238 = vst.msk [vmem:[#allocation2 + $0x88] sm:$0x3] %vm1221_vm9, %v3594_v24 }
  0xd3   : > { %v708_v44 = vpop.permute.xlu1 %707  ;;  %v996_v48 = vsel %vm992_vm3, %v979_v47, %v644_v46  ;;  %1239 = vst.msk [vmem:[#allocation2 + $0x90] sm:$0xff] %vm958_vm1, %v3594_v24  ;;  %v4052_v47 = vld [vmem:[%s5083_s2] ss:$0 sm:$0xff] }
  0xd4   : > { %v1013_v8 = vsel %vm1009_vm4, %v996_v48, %v708_v44  ;;  %1240 = vst.msk [vmem:[#allocation2 + $0x98] sm:$0x3] %vm1221_vm9, %v3594_v24 }
  0xd5   : > { %v1030_v52 = vsel %vm1026_vm5, %v1013_v8, %v772_v17  ;;  %1241 = vst.msk [vmem:[#allocation2 + $0xa0] sm:$0xff] %vm958_vm1, %v3594_v24 }
  0xd6   : > { %1242 = vst.msk [vmem:[#allocation2 + $0xa8] sm:$0x3] %vm1221_vm9, %v3594_v24 }
  0xd7   : > { %1243 = vst.msk [vmem:[#allocation2 + $0xb0] sm:$0xff] %vm958_vm1, %v3594_v24 }
  0xd8   : > { %591 = vrot.lane.b32.xlu2 %v3890_v42, %s5099_s18  ;;  %463 = vrot.lane.b32.xlu0 %v2923_v31, %s3588_s20  ;;  %1244 = vst.msk [vmem:[#allocation2 + $0xb8] sm:$0x3] %vm1221_vm9, %v3594_v24 }
  0xd9   : > { %527 = vrot.lane.b32.xlu1 %v2939_v32, %s3591_s23  ;;  %1245 = vst.msk [vmem:[#allocation2 + $0xc0] sm:$0xff] %vm958_vm1, %v3594_v24 }
  0xda   : > { %v520_v50 = vpop.permute.xlu2 %519  ;;  %v836_v51 = vpop.permute.xlu0 %835  ;;  %1246 = vst.msk [vmem:[#allocation2 + $0xc8] sm:$0x3] %vm1221_vm9, %v3594_v24 }
  0xdb   : > { %v900_v49 = vpop.permute.xlu1 %899  ;;  %v1047_v53 = vsel %vm1043_vm6, %v1030_v52, %v836_v51  ;;  %1247 = vst.msk [vmem:[#allocation2 + $0xd0] sm:$0xff] %vm958_vm1, %v3594_v24 }
  0xdc   : > { %v1064_v54 = vsel %vm1060_vm7, %v1047_v53, %v900_v49  ;;  %1248 = vst.msk [vmem:[#allocation2 + $0xd8] sm:$0x3] %vm1221_vm9, %v3594_v24 }
  0xdd   : > { %2998 = vmatmul.msk.f32.gmra.mxu0 %vm1090_vm8, %v1064_v54  ;;  %1249 = vst.msk [vmem:[#allocation2 + $0xe0] sm:$0xff] %vm958_vm1, %v3594_v24 }
  0xde   : > { %1250 = vst.msk [vmem:[#allocation2 + $0xe8] sm:$0x3] %vm1221_vm9, %v3594_v24 }
  0xdf   : > { %1251 = vst.msk [vmem:[#allocation2 + $0xf0] sm:$0xff] %vm958_vm1, %v3594_v24 }
  0xe0   : > { %783 = vrot.lane.b32.xlu2 %v3908_v55, %s3589_s21  ;;  %655 = vrot.lane.b32.xlu0 %v2971_v39, %s5098_s22  ;;  %1252 = vst.msk [vmem:[#allocation2 + $0xf8] sm:$0x3] %vm1221_vm9, %v3594_v24 }
  0xe1   : > { %719 = vrot.lane.b32.xlu1 %v2987_v40, %s5097_s9  ;;  %1253 = vst.msk [vmem:[#allocation2 + $0x100] sm:$0xff] %vm958_vm1, %v3594_v24 }
  0xe2   : > { %v712_v57 = vpop.permute.xlu2 %711  ;;  %v518_v59 = vpop.permute.xlu0 %517  ;;  %1254 = vst.msk [vmem:[#allocation2 + $0x108] sm:$0x3] %vm1221_vm9, %v3594_v24 }
  0xe3   : > { %v582_v56 = vpop.permute.xlu1 %581  ;;  %v963_v61 = vsel %vm958_vm1, %v946_v58, %v518_v59  ;;  %1255 = vst.msk [vmem:[#allocation2 + $0x110] sm:$0xff] %vm958_vm1, %v3594_v24 }
  0xe4   : > { %v980_v63 = vsel %vm975_vm2, %v963_v61, %v582_v56  ;;  %v4076_v56 = vld [vmem:[%s3693_s17 + $0x100] sm:$0xff]  ;;  %1256 = vst.msk [vmem:[#allocation2 + $0x118] sm:$0x3] %vm1221_vm9, %v3594_v24 }
  0xe5   : > { %v997_v13 = vsel %vm992_vm3, %v980_v63, %v646_v36  ;;  %v4004_v36 = vld [vmem:[%s3693_s17 + $0xf2] sm:$0xff]  ;;  %1257 = vst.msk [vmem:[#allocation2 + $0x120] sm:$0xff] %vm958_vm1, %v3594_v24 }
  0xe6   : > { %1258 = vst.msk [vmem:[#allocation2 + $0x128] sm:$0x3] %vm1221_vm9, %v3594_v24 }
  0xe7   : > { %1259 = vst.msk [vmem:[#allocation2 + $0x130] sm:$0xff] %vm958_vm1, %v3594_v24 }
  0xe8   : > { %465 = vrot.lane.b32.xlu2 %v2971_v39, %s3588_s20  ;;  %847 = vrot.lane.b32.xlu0 %v2972_v62, %s3593_s8  ;;  %v4011_v39 = vld [vmem:[%s3693_s17 + $0xf0] sm:$0xff]  ;;  %1260 = vst.msk [vmem:[#allocation2 + $0x138] sm:$0x3] %vm1221_vm9, %v3594_v24  ;;  %v291_v24 = vld [vmem:[%s3693_s17 + $0xa0] sm:$0xff] }
  0xe9   : > { %911 = vrot.lane.b32.xlu1 %v2988_v60, %s3592_s29 }
  0xea   : > { %v904_v1 = vpop.permute.xlu2 %903  ;;  %v710_v2 = vpop.permute.xlu0 %709 }
  0xeb   : > { %v774_v0 = vpop.permute.xlu1 %773  ;;  %v1014_v4 = vsel %vm1009_vm4, %v997_v13, %v710_v2 }
  0xec   : > { %v1031_v5 = vsel %vm1026_vm5, %v1014_v4, %v774_v0  ;;  %v2975_v0 = vld [vmem:[%s3693_s17 + $0x101] sm:$0xff] }
  0xed   : > { %v1048_v10 = vsel %vm1043_vm6, %v1031_v5, %v838_v45 }
  0xf0   : > { %657 = vrot.lane.b32.xlu2 %v2972_v62, %s5098_s22  ;;  %529 = vrot.lane.b32.xlu0 %v2987_v40, %s3591_s23 }
  0xf1   : > { %593 = vrot.lane.b32.xlu1 %v3908_v55, %s5099_s18 }
  0xf2   : > { %v3931_v7 = vpop.permute.xlu2 %585  ;;  %v902_v9 = vpop.permute.xlu0 %901 }
  0xf3   : > { %v456_v6 = vpop.permute.xlu1 %455  ;;  %v1065_v11 = vsel %vm1060_vm7, %v1048_v10, %v902_v9 }
  0xf4   : > { %2999 = vmatmul.msk.f32.gmra.mxu0 %vm1090_vm8, %v1065_v11  ;;  %v947_v16 = vsel %vm941_vm0, %v3752_v14, %v456_v6  ;;  %v4121_v6 = vld [vmem:[%s5084_s3 + $0x88] sm:$0xff] }
  0xf5   : > { %v964_v20 = vsel %vm958_vm1, %v947_v16, %v520_v50  ;;  %3167 = vmatpush.msra.mxu2 %v4121_v6 }
  0xf8   : > { %849 = vrot.lane.b32.xlu2 %v3940_v15, %s3593_s8  ;;  %721 = vrot.lane.b32.xlu0 %v2988_v60, %s5097_s9 }
  0xf9   : > { %785 = vrot.lane.b32.xlu1 %v3937_v12, %s3589_s21 }
  0xfa   : > { %v3949_v18 = vpop.permute.xlu2 %777  ;;  %v584_v19 = vpop.permute.xlu0 %583 }
  0xfb   : > { %v648_v17 = vpop.permute.xlu1 %647  ;;  %v981_v21 = vsel %vm975_vm2, %v964_v20, %v584_v19 }
  0xfc   : > { %v998_v25 = vsel %vm992_vm3, %v981_v21, %v648_v17  ;;  %v4142_v21 = vld [vmem:[%s3693_s17 + $0x110] sm:$0xff] }
  0xfd   : > { %v1015_v27 = vsel %vm1009_vm4, %v998_v25, %v712_v57 }
 0x100   : > { %531 = vrot.lane.b32.xlu2 %v2988_v60, %s3591_s23  ;;  %913 = vrot.lane.b32.xlu0 %v2989_v22, %s3592_s29 }
 0x101   : > { %467 = vrot.lane.b32.xlu1 %v2972_v62, %s3588_s20  ;;  %v2991_v62 = vld [vmem:[%s3693_s17 + $0x102] sm:$0xff] }
 0x102   : > { %v3964_v3 = vpop.permute.xlu2 %459  ;;  %v776_v26 = vpop.permute.xlu0 %775 }
 0x103   : > { %v840_v14 = vpop.permute.xlu1 %839  ;;  %v1032_v28 = vsel %vm1026_vm5, %v1015_v27, %v776_v26  ;;  %v949_v60 = vsel %vm941_vm0, %v3813_v37, %v3964_v3 }
 0x104   : > { %v1049_v29 = vsel %vm1043_vm6, %v1032_v28, %v840_v14 }
 0x105   : > { %v1066_v30 = vsel %vm1060_vm7, %v1049_v29, %v904_v1  ;;  %v2992_v29 = vld [vmem:[%s3693_s17 + $0x112] sm:$0xff] }
 0x106   : > { %3000 = vmatmul.msk.f32.gmra.mxu0 %vm1090_vm8, %v1066_v30 }
 0x108   : > { %723 = vrot.lane.b32.xlu2 %v2989_v22, %s5097_s9  ;;  %595 = vrot.lane.b32.xlu0 %v3937_v12, %s5099_s18 }
 0x109   : > { %659 = vrot.lane.b32.xlu1 %v3940_v15, %s5098_s22 }
 0x10a   : > { %v3992_v32 = vpop.permute.xlu2 %651  ;;  %v458_v33 = vpop.permute.xlu0 %457 }
 0x10b   : > { %v522_v31 = vpop.permute.xlu1 %521  ;;  %v948_v38 = vsel %vm941_vm0, %v3783_v23, %v458_v33 }
 0x10c   : > { %v965_v40 = vsel %vm958_vm1, %v948_v38, %v522_v31 }
 0x10d   : > { %v982_v44 = vsel %vm975_vm2, %v965_v40, %v3931_v7  ;;  %v4127_v7 = vld [vmem:[%s5084_s3 + $0x80] sm:$0xff] }
 0x10e   : > { %3168 = vmatpush.msra.mxu2 %v4127_v7 }
 0x110   : > { %915 = vrot.lane.b32.xlu2 %v4004_v36, %s3592_s29  ;;  %787 = vrot.lane.b32.xlu0 %v4011_v39, %s3589_s21 }
 0x111   : > { %851 = vrot.lane.b32.xlu1 %v4001_v35, %s3593_s8 }
 0x112   : > { %v4028_v41 = vpop.permute.xlu2 %843  ;;  %v650_v43 = vpop.permute.xlu0 %649 }
 0x113   : > { %v714_v23 = vpop.permute.xlu1 %713  ;;  %v999_v45 = vsel %vm992_vm3, %v982_v44, %v650_v43 }
 0x114   : > { %v1016_v46 = vsel %vm1009_vm4, %v999_v45, %v714_v23 }
 0x115   : > { %v1033_v50 = vsel %vm1026_vm5, %v1016_v46, %v3949_v18 }
 0x118   : > { %597 = vrot.lane.b32.xlu2 %v4011_v39, %s5099_s18  ;;  %469 = vrot.lane.b32.xlu0 %v3940_v15, %s3588_s20 }
 0x119   : > { %533 = vrot.lane.b32.xlu1 %v2989_v22, %s3591_s23  ;;  %v2976_v22 = vld [vmem:[%s3693_s17 + $0x111] sm:$0xff] }
 0x11a   : > { %v4060_v8 = vpop.permute.xlu2 %525  ;;  %v842_v49 = vpop.permute.xlu0 %841 }
 0x11b   : > { %v906_v48 = vpop.permute.xlu1 %905  ;;  %v1156_v51 = vpop.f32.mrf.mxu0  ;;  %v1050_v52 = vsel %vm1043_vm6, %v1033_v50, %v842_v49  ;;  %v2961_v50 = vld [vmem:[%s3693_s17 + $0x120] sm:$0xff] }
 0x11c   : > { %v1157_v53 = vadd.f32 %v4052_v47, %v1156_v51  ;;  %v1067_v54 = vsel %vm1060_vm7, %v1050_v52, %v906_v48  ;;  %v2977_v48 = vld [vmem:[%s3693_s17 + $0x121] sm:$0xff] }
 0x11d   : > { %3001 = vmatmul.msk.f32.gmra.mxu0 %vm1090_vm8, %v1067_v54 }
 0x11e   : > { %v1204_v57 = vmax.f32 %v1157_v53, 0.0 }
 0x120   : > { %1262 = vst.msk [vmem:[#allocation2 + $0x11] sm:$0xff] %vm958_vm1, %v1204_v57  ;;  %789 = vrot.lane.b32.xlu2 %v4076_v56, %s3589_s21  ;;  %661 = vrot.lane.b32.xlu0 %v4001_v35, %s5098_s22 }
 0x121   : > { %725 = vrot.lane.b32.xlu1 %v4004_v36, %s5097_s9 }
 0x122   : > { %v718_v59 = vpop.permute.xlu2 %717  ;;  %v524_v61 = vpop.permute.xlu0 %523 }
 0x123   : > { %v588_v58 = vpop.permute.xlu1 %587  ;;  %v966_v63 = vsel %vm958_vm1, %v949_v60, %v524_v61 }
 0x124   : > { %v983_v37 = vsel %vm975_vm2, %v966_v63, %v588_v58 }
 0x125   : > { %v1000_v4 = vsel %vm992_vm3, %v983_v37, %v3992_v32 }
 0x128   : > { %471 = vrot.lane.b32.xlu2 %v4001_v35, %s3588_s20  ;;  %853 = vrot.lane.b32.xlu0 %v2975_v0, %s3593_s8 }
 0x129   : > { %917 = vrot.lane.b32.xlu1 %v2991_v62, %s3592_s29 }
 0x12a   : > { %v910_v2 = vpop.permute.xlu2 %909  ;;  %v716_v13 = vpop.permute.xlu0 %715 }
 0x12b   : > { %v780_v1 = vpop.permute.xlu1 %779  ;;  %v1017_v5 = vsel %vm1009_vm4, %v1000_v4, %v716_v13  ;;  %v2962_v13 = vld [vmem:[%s3693_s17 + $0x130] sm:$0xff] }
 0x12c   : > { %v1034_v9 = vsel %vm1026_vm5, %v1017_v5, %v780_v1 }
 0x12d   : > { %v1051_v18 = vsel %vm1043_vm6, %v1034_v9, %v4028_v41 }
 0x130   : > { %663 = vrot.lane.b32.xlu2 %v2975_v0, %s5098_s22  ;;  %535 = vrot.lane.b32.xlu0 %v4004_v36, %s3591_s23 }
 0x131   : > { %599 = vrot.lane.b32.xlu1 %v4076_v56, %s5099_s18  ;;  %v1159_v10 = vpop.f32.mrf.mxu0 }
 0x132   : > { %v1160_v15 = vadd.f32 %v4052_v47, %v1159_v10  ;;  %v592_v16 = vpop.permute.xlu2 %591  ;;  %v908_v17 = vpop.permute.xlu0 %907 }
 0x133   : > { %v462_v11 = vpop.permute.xlu1 %461  ;;  %v1068_v19 = vsel %vm1060_vm7, %v1051_v18, %v908_v17  ;;  %v2994_v17 = vld [vmem:[%s3693_s17 + $0x132] sm:$0xff] }
 0x134   : > { %v1205_v20 = vmax.f32 %v1160_v15, 0.0  ;;  %3002 = vmatmul.msk.f32.gmra.mxu0 %vm1090_vm8, %v1068_v19  ;;  %v950_v25 = vsel %vm941_vm0, %v291_v24, %v462_v11  ;;  %v1294_v15 = vld [vmem:[#allocation2 + $0x1] sm:$0xff]  ;;  %v2978_v19 = vld [vmem:[%s3693_s17 + $0x131] sm:$0xff] }
 0x135   : > { %v967_v27 = vsel %vm958_vm1, %v950_v25, %v4060_v8  ;;  %v2993_v8 = vld [vmem:[%s3693_s17 + $0x122] sm:$0xff]  ;;  %s3595_s17 = smov 96  }
 0x136   : > { %1263 = vst.msk [vmem:[#allocation2 + $0x21] sm:$0xff] %vm958_vm1, %v1205_v20 }
 0x138   : > { %855 = vrot.lane.b32.xlu2 %v2976_v22, %s3593_s8  ;;  %727 = vrot.lane.b32.xlu0 %v2991_v62, %s5097_s9 }
 0x139   : > { %791 = vrot.lane.b32.xlu1 %v4142_v21, %s3589_s21 }
 0x13a   : > { %v784_v3 = vpop.permute.xlu2 %783  ;;  %v590_v26 = vpop.permute.xlu0 %589 }
 0x13b   : > { %v654_v14 = vpop.permute.xlu1 %653  ;;  %v984_v28 = vsel %vm975_vm2, %v967_v27, %v590_v26 }
 0x13c   : > { %v1001_v30 = vsel %vm992_vm3, %v984_v28, %v654_v14  ;;  %v1310_v28 = vld [vmem:[#allocation2 + $0x2] sm:$0xff] }
 0x13d   : > { %v1018_v35 = vsel %vm1009_vm4, %v1001_v30, %v718_v59  ;;  %v1343_v26 = vld [vmem:[#allocation2 + $0x21] sm:$0xff] }
 0x140   : > { %537 = vrot.lane.b32.xlu2 %v2991_v62, %s3591_s23  ;;  %919 = vrot.lane.b32.xlu0 %v2992_v29, %s3592_s29 }
 0x141   : > { %473 = vrot.lane.b32.xlu1 %v2975_v0, %s3588_s20 }
 0x142   : > { %v466_v32 = vpop.permute.xlu2 %465  ;;  %v782_v33 = vpop.permute.xlu0 %781 }
 0x143   : > { %v846_v31 = vpop.permute.xlu1 %845  ;;  %v1035_v36 = vsel %vm1026_vm5, %v1018_v35, %v782_v33  ;;  %v1162_v38 = vpop.f32.mrf.mxu0  ;;  %v952_v9 = vsel %vm941_vm0, %v3890_v42, %v466_v32 }
 0x144   : > { %v1163_v40 = vadd.f32 %v4052_v47, %v1162_v38  ;;  %v1052_v23 = vsel %vm1043_vm6, %v1035_v36, %v846_v31  ;;  %v4223_v31 = vld [vmem:[#allocation2 + $0x10] sm:$0xff] }
 0x145   : > { %v1069_v41 = vsel %vm1060_vm7, %v1052_v23, %v910_v2 }
 0x146   : > { %v1206_v43 = vmax.f32 %v1163_v40, 0.0  ;;  %3003 = vmatmul.msk.f32.gmra.mxu0 %vm1090_vm8, %v1069_v41 }
 0x148   : > { %729 = vrot.lane.b32.xlu2 %v2992_v29, %s5097_s9  ;;  %1264 = vst.msk [vmem:[#allocation2 + $0x31] sm:$0xff] %vm958_vm1, %v1206_v43  ;;  %601 = vrot.lane.b32.xlu0 %v4142_v21, %s5099_s18 }
 0x149   : > { %665 = vrot.lane.b32.xlu1 %v2976_v22, %s5098_s22 }
 0x14a   : > { %v658_v45 = vpop.permute.xlu2 %657  ;;  %v464_v46 = vpop.permute.xlu0 %463 }
 0x14b   : > { %v528_v44 = vpop.permute.xlu1 %527  ;;  %v951_v49 = vsel %vm941_vm0, %v3878_v34, %v464_v46 }
 0x14c   : > { %v968_v52 = vsel %vm958_vm1, %v951_v49, %v528_v44 }
 0x14d   : > { %v985_v34 = vsel %vm975_vm2, %v968_v52, %v592_v16  ;;  %v1295_v16 = vld [vmem:[#allocation2 + $0x11] sm:$0xff] }
 0x14e   : > { %v3225_v20 = vpack.i.bf16 %v1295_v16, %v1294_v15  ;;  %v3240_v33 = vpack.i.bf16 %v1343_v26, %v1295_v16 }
 0x14f   : > { %v4178_v51 = vld [vmem:[#allocation2 + $0x32] sm:$0xff] }
 0x150   : > { %921 = vrot.lane.b32.xlu2 %v2993_v8, %s3592_s29  ;;  %793 = vrot.lane.b32.xlu0 %v2961_v50, %s3589_s21  ;;  %v1392_v46 = vld [vmem:[#allocation2 + $0x31] sm:$0xff] }
 0x151   : > { %857 = vrot.lane.b32.xlu1 %v2977_v48, %s3593_s8  ;;  %3012 = vmatmul.msk.f32.vlgmr.msra.gmra.mxu2 %vm958_vm1, %v4178_v51  ;;  %v3255_v52 = vpack.i.bf16 %v1392_v46, %v1343_v26 }
 0x152   : > { %v850_v54 = vpop.permute.xlu2 %849  ;;  %v656_v57 = vpop.permute.xlu0 %655 }
 0x153   : > { %v720_v53 = vpop.permute.xlu1 %719  ;;  %v1002_v58 = vsel %vm992_vm3, %v985_v34, %v656_v57 }
 0x154   : > { %v1019_v59 = vsel %vm1009_vm4, %v1002_v58, %v720_v53 }
 0x155   : > { %v1036_v63 = vsel %vm1026_vm5, %v1019_v59, %v784_v3  ;;  %v4219_v3 = vld [vmem:[#allocation2 + $0x20] sm:$0xff] }
 0x156   : > { %v3235_v32 = vpack.i.bf16 %v4219_v3, %v4223_v31 }
 0x158   : > { %603 = vrot.lane.b32.xlu2 %v2961_v50, %s5099_s18  ;;  %475 = vrot.lane.b32.xlu0 %v2976_v22, %s3588_s20 }
 0x159   : > { %539 = vrot.lane.b32.xlu1 %v2992_v29, %s3591_s23  ;;  %v1311_v29 = vld [vmem:[#allocation2 + $0x12] sm:$0xff] }
 0x15a   : > { %v4190_v61 = vpop.permute.xlu2 %531  ;;  %v848_v62 = vpop.permute.xlu0 %847  ;;  %v3230_v35 = vpack.i.bf16 %v1311_v29, %v1310_v28 }
 0x15b   : > { %v912_v60 = vpop.permute.xlu1 %911  ;;  %v1053_v0 = vsel %vm1043_vm6, %v1036_v63, %v848_v62  ;;  %v1165_v37 = vpop.f32.mrf.mxu0 }
 0x15c   : > { %v1166_v1 = vadd.f32 %v4052_v47, %v1165_v37  ;;  %v1070_v2 = vsel %vm1060_vm7, %v1053_v0, %v912_v60 }
 0x15d   : > { %3004 = vmatmul.msk.f32.gmra.mxu0 %vm1090_vm8, %v1070_v2 }
 0x15e   : > { %v1207_v4 = vmax.f32 %v1166_v1, 0.0 }
 0x160   : > { %795 = vrot.lane.b32.xlu2 %v2962_v13, %s3589_s21  ;;  %1265 = vst.msk [vmem:[#allocation2 + $0x41] sm:$0xff] %vm958_vm1, %v1207_v4  ;;  %667 = vrot.lane.b32.xlu0 %v2977_v48, %s5098_s22 }
 0x161   : > { %731 = vrot.lane.b32.xlu1 %v2993_v8, %s5097_s9  ;;  %v4238_v8 = vld [vmem:[#allocation2 + $0x22] sm:$0xff]  ;;  %s3597_s9 = smov 80  }
 0x162   : > { %v4204_v10 = vpop.permute.xlu2 %723  ;;  %v530_v11 = vpop.permute.xlu0 %529  ;;  %v3245_v53 = vpack.i.bf16 %v4238_v8, %v1311_v29  ;;  %v3265_v0 = vpack.i.bf16 %v4178_v51, %v4238_v8 }
 0x163   : > { %v594_v5 = vpop.permute.xlu1 %593  ;;  %v969_v18 = vsel %vm958_vm1, %v952_v9, %v530_v11 }
 0x164   : > { %v986_v24 = vsel %vm975_vm2, %v969_v18, %v594_v5 }
 0x165   : > { %v1003_v27 = vsel %vm992_vm3, %v986_v24, %v658_v45  ;;  %v4235_v45 = vld [vmem:[#allocation2 + $0x30] sm:$0xff] }
 0x166   : > { %v3250_v50 = vpack.i.bf16 %v4235_v45, %v4219_v3 }
 0x167   : > { %v4209_v22 = vld [vmem:[#allocation2 + $0x42] sm:$0xff] }
 0x168   : > { %3226 = vrot.lane.b32.xlu2 %v3225_v20, %s3591_s23  ;;  %3013 = vmatmul.msk.f32.gmra.mxu2 %vm958_vm1, %v4209_v22  ;;  %v4250_v58 = vld [vmem:[#allocation2 + $0x40] sm:$0xff] }
 0x169   : > { %923 = vrot.lane.b32.xlu1 %v2994_v17, %s3592_s29  ;;  %859 = vrot.lane.b32.xlu0 %v2978_v19, %s3593_s8  ;;  %s3596_s8 = smov 112   ;;  %v1345_v9 = vld [vmem:[#allocation2 + $0x41] sm:$0xff]  ;;  %v3280_v17 = vpack.i.bf16 %v4209_v22, %v4178_v51 }
 0x16a   : > { %v4217_v25 = vpop.permute.xlu2 %915  ;;  %v722_v14 = vpop.permute.xlu0 %721  ;;  %v3275_v20 = vpack.i.bf16 %v1345_v9, %v1392_v46 }
 0x16b   : > { %v786_v42 = vpop.permute.xlu1 %785  ;;  %v1020_v30 = vsel %vm1009_vm4, %v1003_v27, %v722_v14 }
 0x16c   : > { %v1037_v36 = vsel %vm1026_vm5, %v1020_v30, %v786_v42 }
 0x16d   : > { %v1054_v44 = vsel %vm1043_vm6, %v1037_v36, %v850_v54 }
 0x170   : > { %3241 = vrot.lane.b32.xlu2 %v3240_v33, %s3592_s29 }
 0x171   : > { %3236 = vrot.lane.b32.xlu1 %v3235_v32, %s3589_s21  ;;  %3231 = vrot.lane.b32.xlu0 %v3230_v35, %s5098_s22  ;;  %v1168_v38 = vpop.f32.mrf.mxu0 }
 0x172   : > { %v1169_v23 = vadd.f32 %v4052_v47, %v1168_v38  ;;  %v4232_v41 = vpop.permute.xlu2 %597  ;;  %v914_v43 = vpop.permute.xlu0 %913 }
 0x173   : > { %v468_v40 = vpop.permute.xlu1 %467  ;;  %v1071_v48 = vsel %vm1060_vm7, %v1054_v44, %v914_v43 }
 0x174   : > { %v1208_v49 = vmax.f32 %v1169_v23, 0.0  ;;  %3005 = vmatmul.msk.f32.gmra.mxu0 %vm1090_vm8, %v1071_v48  ;;  %v953_v54 = vsel %vm941_vm0, %v3908_v55, %v468_v40  ;;  %v3270_v55 = vpack.i.bf16 %v4250_v58, %v4235_v45 }
 0x175   : > { %v970_v59 = vsel %vm958_vm1, %v953_v54, %v4190_v61 }
 0x176   : > { %1266 = vst.msk [vmem:[#allocation2 + $0x51] sm:$0xff] %vm958_vm1, %v1208_v49 }
 0x178   : > { %3256 = vrot.lane.b32.xlu2 %v3255_v52, %s3596_s8 }
 0x179   : > { %3251 = vrot.lane.b32.xlu1 %v3250_v50, %s3595_s17  ;;  %3246 = vrot.lane.b32.xlu0 %v3245_v53, %s3597_s9 }
 0x17a   : > { %v596_v34 = vpop.permute.xlu0 %595  ;;  %v790_v60 = vpop.permute.xlu2 %789 }
 0x17b   : > { %v660_v57 = vpop.permute.xlu1 %659  ;;  %v987_v62 = vsel %vm975_vm2, %v970_v59, %v596_v34 }
 0x17c   : > { %v1004_v37 = vsel %vm992_vm3, %v987_v62, %v660_v57 }
 0x17d   : > { %v1410_v63 = vld [vmem:[#allocation2 + $0x52] sm:$0xff]  ;;  %v1021_v2 = vsel %vm1009_vm4, %v1004_v37, %v4204_v10 }
 0x17e   : > { %3014 = vmatmul.msk.f32.gmra.mxu2 %vm958_vm1, %v1410_v63  ;;  %v4266_v13 = vld [vmem:[#allocation2 + $0x50] sm:$0xff]  ;;  %v3300_v26 = vpack.i.bf16 %v4209_v22, %v1410_v63 }
 0x17f   : > { %v3285_v18 = vpack.i.bf16 %v4266_v13, %v4250_v58 }
 0x180   : > { %3271 = vrot.lane.b32.xlu2 %v3270_v55, %s3589_s21 }
 0x181   : > { %3266 = vrot.lane.b32.xlu1 %v3265_v0, %s5098_s22  ;;  %3261 = vrot.lane.b32.xlu0 %v3255_v52, %s3591_s23 }
 0x182   : > { %v788_v1 = vpop.permute.xlu0 %787  ;;  %v472_v10 = vpop.permute.xlu2 %471 }
 0x183   : > { %v852_v61 = vpop.permute.xlu1 %851  ;;  %v1038_v4 = vsel %vm1026_vm5, %v1021_v2, %v788_v1  ;;  %v1171_v5 = vpop.f32.mrf.mxu0  ;;  %v955_v34 = vsel %vm941_vm0, %v4011_v39, %v472_v10 }
 0x184   : > { %v1172_v11 = vadd.f32 %v4052_v47, %v1171_v5  ;;  %v1055_v15 = vsel %vm1043_vm6, %v1038_v4, %v852_v61 }
 0x185   : > { %v1072_v16 = vsel %vm1060_vm7, %v1055_v15, %v4217_v25  ;;  %v1299_v25 = vld [vmem:[#allocation2 + $0x51] sm:$0xff] }
 0x186   : > { %v1209_v19 = vmax.f32 %v1172_v11, 0.0  ;;  %3006 = vmatmul.msk.f32.gmra.mxu0 %vm1090_vm8, %v1072_v16  ;;  %v3295_v14 = vpack.i.bf16 %v1345_v9, %v1299_v25  ;;  %v3290_v27 = vpack.i.bf16 %v1299_v25, %v1345_v9  ;;  %v2001_v11 = vld [vmem:[%s5084_s3 + $0x78] sm:$0xff] }
 0x187   : > { %2056 = vmatpush.msrb.mxu0 %v2001_v11  ;;  %3151 = vmatpush.msra.mxu1 %v2001_v11 }
 0x188   : > { %3286 = vrot.lane.b32.xlu2 %v3285_v18, %s3595_s17  ;;  %1267 = vst.msk [vmem:[#allocation2 + $0x61] sm:$0xff] %vm958_vm1, %v1209_v19 }
 0x189   : > { %3281 = vrot.lane.b32.xlu1 %v3280_v17, %s3597_s9  ;;  %3276 = vrot.lane.b32.xlu0 %v3275_v20, %s3592_s29 }
 0x18a   : > { %v470_v42 = vpop.permute.xlu0 %469  ;;  %v664_v29 = vpop.permute.xlu2 %663 }
 0x18b   : > { %v534_v24 = vpop.permute.xlu1 %533  ;;  %v954_v51 = vsel %vm941_vm0, %v3937_v12, %v470_v42 }
 0x18c   : > { %v971_v30 = vsel %vm958_vm1, %v954_v51, %v534_v24  ;;  %v2000_v51 = vld [vmem:[%s5084_s3 + $0x70] sm:$0xff] }
 0x18d   : > { %v988_v12 = vsel %vm975_vm2, %v971_v30, %v4232_v41  ;;  %2057 = vmatpush.msrb.mxu0 %v2000_v51  ;;  %3152 = vmatpush.msra.mxu1 %v2000_v51 }
 0x18f   : > { %v1411_v28 = vld [vmem:[#allocation2 + $0x62] sm:$0xff] }
 0x190   : > { %3301 = vrot.lane.b32.xlu2 %v3300_v26, %s5098_s22  ;;  %3015 = vmatmul.msk.f32.gmra.mxu2 %vm958_vm1, %v1411_v28  ;;  %v1347_v35 = vld [vmem:[#allocation2 + $0x61] sm:$0xff]  ;;  %v3315_v40 = vpack.i.bf16 %v1410_v63, %v1411_v28 }
 0x191   : > { %3296 = vrot.lane.b32.xlu1 %v3295_v14, %s3591_s23  ;;  %3291 = vrot.lane.b32.xlu0 %v3290_v27, %s3596_s8  ;;  %v4292_v22 = vld [vmem:[#allocation2 + $0x60] sm:$0xff]  ;;  %v3310_v38 = vpack.i.bf16 %v1299_v25, %v1347_v35  ;;  %v1999_v14 = vld [vmem:[%s5084_s3 + $0x68] sm:$0xff] }
 0x192   : > { %v662_v33 = vpop.permute.xlu0 %661  ;;  %v3305_v23 = vpack.i.bf16 %v4266_v13, %v4292_v22  ;;  %v856_v46 = vpop.permute.xlu2 %855  ;;  %v1998_v26 = vld [vmem:[%s5084_s3 + $0x60] sm:$0xff]  ;;  %2058 = vmatpush.msrb.mxu0 %v1999_v14  ;;  %3153 = vmatpush.msra.mxu1 %v1999_v14 }
 0x193   : > { %v726_v32 = vpop.permute.xlu1 %725  ;;  %v1005_v36 = vsel %vm992_vm3, %v988_v12, %v662_v33  ;;  %v1996_v12 = vld [vmem:[%s5084_s3 + $0x50] sm:$0xff] }
 0x194   : > { %v1022_v43 = vsel %vm1009_vm4, %v1005_v36, %v726_v32  ;;  %2059 = vmatpush.msrb.mxu0 %v1998_v26  ;;  %3154 = vmatpush.msra.mxu1 %v1998_v26 }
 0x195   : > { %v1039_v48 = vsel %vm1026_vm5, %v1022_v43, %v790_v60 }
 0x198   : > { %3316 = vrot.lane.b32.xlu2 %v3315_v40, %s3597_s9 }
 0x199   : > { %3311 = vrot.lane.b32.xlu1 %v3310_v38, %s3592_s29  ;;  %3306 = vrot.lane.b32.xlu0 %v3305_v23, %s3589_s21 }
 0x19a   : > { %v854_v41 = vpop.permute.xlu0 %853  ;;  %v1174_v50 = vpop.f32.mrf.mxu0 }
 0x19b   : > { %v918_v44 = vpop.permute.xlu1 %917  ;;  %v1056_v49 = vsel %vm1043_vm6, %v1039_v48, %v854_v41  ;;  %v1175_v52 = vadd.f32 %v4052_v47, %v1174_v50  ;;  %v538_v62 = vpop.permute.xlu2 %537  ;;  %v1994_v41 = vld [vmem:[%s5084_s3 + $0x40] sm:$0xff]  ;;  %v1993_v48 = vld [vmem:[%s5084_s3 + $0x38] sm:$0xff] }
 0x19c   : > { %v1073_v53 = vsel %vm1060_vm7, %v1056_v49, %v918_v44  ;;  %v1995_v44 = vld [vmem:[%s5084_s3 + $0x48] sm:$0xff] }
 0x19d   : > { %3007 = vmatmul.msk.f32.gmra.mxu0 %vm1090_vm8, %v1073_v53  ;;  %v1210_v54 = vmax.f32 %v1175_v52, 0.0 }
 0x19f   : > { %1268 = vst.msk [vmem:[#allocation2 + $0x71] sm:$0xff] %vm958_vm1, %v1210_v54 }
 0x1a2   : > { %v536_v59 = vpop.permute.xlu0 %535 }
 0x1a3   : > { %v600_v57 = vpop.permute.xlu1 %599  ;;  %v972_v60 = vsel %vm958_vm1, %v955_v34, %v536_v59  ;;  %v730_v15 = vpop.permute.xlu2 %729  ;;  %v1382_v34 = vld [vmem:[#allocation2 + $0x90] sm:$0xff] }
 0x1a4   : > { %v989_v37 = vsel %vm975_vm2, %v972_v60, %v600_v57  ;;  %v1414_v59 = vld [vmem:[#allocation2 + $0x92] sm:$0xff] }
 0x1a5   : > { %v1006_v5 = vsel %vm992_vm3, %v989_v37, %v664_v29  ;;  %v1997_v29 = vld [vmem:[%s5084_s3 + $0x58] sm:$0xff] }
 0x1a6   : > { %v4310_v63 = vld [vmem:[#allocation2 + $0x72] sm:$0xff]  ;;  %2060 = vmatpush.msrb.mxu0 %v1997_v29  ;;  %3155 = vmatpush.msra.mxu1 %v1997_v29 }
 0x1a7   : > { %v4312_v0 = vld [vmem:[#allocation2 + $0x71] sm:$0xff]  ;;  %3016 = vmatmul.msk.f32.gmra.mxu2 %vm958_vm1, %v4310_v63  ;;  %v3335_v17 = vpack.i.bf16 %v4310_v63, %v1411_v28 }
 0x1a8   : > { %v4314_v55 = vld [vmem:[#allocation2 + $0x70] sm:$0xff]  ;;  %v3325_v61 = vpack.i.bf16 %v1347_v35, %v4312_v0  ;;  %v3330_v1 = vpack.i.bf16 %v4312_v0, %v1347_v35  ;;  %2061 = vmatpush.msrb.mxu0 %v1996_v12  ;;  %3156 = vmatpush.msra.mxu1 %v1996_v12 }
 0x1a9   : > { %v3320_v39 = vpack.i.bf16 %v4292_v22, %v4314_v55 }
 0x1aa   : > { %3326 = vrot.lane.b32.xlu1 %v3325_v61, %s3596_s8  ;;  %v728_v4 = vpop.permute.xlu0 %727  ;;  %3331 = vrot.lane.b32.xlu2 %v3330_v1, %s3591_s23  ;;  %v1991_v1 = vld [vmem:[%s5084_s3 + $0x28] sm:$0xff] }
 0x1ab   : > { %v792_v2 = vpop.permute.xlu1 %791  ;;  %3321 = vrot.lane.b32.xlu0 %v3320_v39, %s3595_s17  ;;  %v1023_v9 = vsel %vm1009_vm4, %v1006_v5, %v728_v4  ;;  %v922_v27 = vpop.permute.xlu2 %921  ;;  %2062 = vmatpush.msrb.mxu0 %v1995_v44  ;;  %v1989_v5 = vld [vmem:[%s5084_s3 + $0x18] sm:$0xff] }
 0x1ac   : > { %v1040_v16 = vsel %vm1026_vm5, %v1023_v9, %v792_v2  ;;  %3157 = vmatpush.msra.mxu1 %v1995_v44  ;;  %v1990_v2 = vld [vmem:[%s5084_s3 + $0x20] sm:$0xff] }
 0x1ad   : > { %v1057_v24 = vsel %vm1043_vm6, %v1040_v16, %v856_v46  ;;  %2063 = vmatpush.msrb.mxu0 %v1994_v41  ;;  %v1988_v16 = vld [vmem:[%s5084_s3 + $0x10] sm:$0xff] }
 0x1ae   : > { %3158 = vmatpush.msra.mxu1 %v1994_v41 }
 0x1af   : > { %2064 = vmatpush.msrb.mxu0 %v1993_v48 }
 0x1b0   : > { %3159 = vmatpush.msra.mxu1 %v1993_v48 }
 0x1b1   : > { %v1177_v18 = vpop.f32.mrf.mxu0 }
 0x1b2   : > { %v1178_v19 = vadd.f32 %v4052_v47, %v1177_v18  ;;  %v920_v20 = vpop.permute.xlu0 %919 }
 0x1b3   : > { %v474_v10 = vpop.permute.xlu1 %473  ;;  %3336 = vrot.lane.b32.xlu0 %v3335_v17, %s5098_s22  ;;  %v1074_v42 = vsel %vm1060_vm7, %v1057_v24, %v920_v20  ;;  %v604_v50 = vpop.permute.xlu2 %603  ;;  %v1987_v17 = vld [vmem:[%s5084_s3 + $0x8] sm:$0xff]  ;;  %v1986_v20 = vld [vmem:[%s5084_s3] sm:$0xff] }
 0x1b4   : > { %v1211_v25 = vmax.f32 %v1178_v19, 0.0  ;;  %3008 = vmatmul.msk.f32.gmra.mxu0 %vm1090_vm8, %v1074_v42  ;;  %v956_v28 = vsel %vm941_vm0, %v4076_v56, %v474_v10  ;;  %v1318_v10 = vld [vmem:[#allocation2 + $0xa2] sm:$0xff] }
 0x1b5   : > { %v973_v33 = vsel %vm958_vm1, %v956_v28, %v538_v62  ;;  %v1302_v19 = vld [vmem:[#allocation2 + $0xa1] sm:$0xff] }
 0x1b6   : > { %1269 = vst.msk [vmem:[#allocation2 + $0x81] sm:$0xff] %vm958_vm1, %v1211_v25 }
 0x1ba   : > { %v602_v32 = vpop.permute.xlu0 %601 }
 0x1bb   : > { %v666_v30 = vpop.permute.xlu1 %665  ;;  %v990_v35 = vsel %vm975_vm2, %v973_v33, %v602_v32 }
 0x1bc   : > { %v1007_v46 = vsel %vm992_vm3, %v990_v35, %v666_v30 }
 0x1bd   : > { %v1413_v36 = vld [vmem:[#allocation2 + $0x82] sm:$0xff]  ;;  %v1024_v53 = vsel %vm1009_vm4, %v1007_v46, %v730_v15  ;;  %v796_v15 = vpop.permute.xlu2 %795 }
 0x1be   : > { %v1333_v56 = vld [vmem:[#allocation2 + $0x80] sm:$0xff]  ;;  %3017 = vmatmul.msk.f32.gmra.mxu2 %vm958_vm1, %v1413_v36  ;;  %v3350_v23 = vpack.i.bf16 %v1413_v36, %v4310_v63  ;;  %v1398_v63 = vld [vmem:[#allocation2 + $0x91] sm:$0xff] }
 0x1bf   : > { %v1349_v38 = vld [vmem:[#allocation2 + $0x81] sm:$0xff]  ;;  %v3340_v40 = vpack.i.bf16 %v1333_v56, %v4314_v55  ;;  %v3355_v39 = vpack.i.bf16 %v1382_v34, %v1333_v56 }
 0x1c0   : > { %v3345_v43 = vpack.i.bf16 %v1349_v38, %v4312_v0  ;;  %3351 = vrot.lane.b32.xlu0 %v3350_v23, %s3597_s9  ;;  %v1992_v0 = vld [vmem:[%s5084_s3 + $0x30] sm:$0xff]  ;;  %v3360_v4 = vpack.i.bf16 %v1398_v63, %v1349_v38 }
 0x1c1   : > { %3341 = vrot.lane.b32.xlu1 %v3340_v40, %s3589_s21  ;;  %2065 = vmatpush.msrb.mxu0 %v1992_v0 }
 0x1c2   : > { %3346 = vrot.lane.b32.xlu2 %v3345_v43, %s3592_s29  ;;  %v794_v52 = vpop.permute.xlu0 %793  ;;  %3160 = vmatpush.msra.mxu1 %v1992_v0  ;;  %v1278_v43 = vld [vmem:[#allocation2] sm:$0xff] }
 0x1c3   : > { %v858_v49 = vpop.permute.xlu1 %857  ;;  %v1041_v54 = vsel %vm1026_vm5, %v1024_v53, %v794_v52  ;;  %v1180_v57 = vpop.f32.mrf.mxu0  ;;  %2066 = vmatpush.msrb.mxu0 %v1991_v1 }
 0x1c4   : > { %v1181_v62 = vadd.f32 %v4052_v47, %v1180_v57  ;;  %v1058_v60 = vsel %vm1043_vm6, %v1041_v54, %v858_v49  ;;  %3161 = vmatpush.msra.mxu1 %v1991_v1 }
 0x1c5   : > { %v1075_v37 = vsel %vm1060_vm7, %v1058_v60, %v922_v27  ;;  %2067 = vmatpush.msrb.mxu0 %v1990_v2  ;;  %v3227_v29 = vpop.permute.xlu2 %3226 }
 0x1c6   : > { %v1212_v61 = vmax.f32 %v1181_v62, 0.0  ;;  %3009 = vmatmul.msk.f32.gmra.mxu0 %vm1090_vm8, %v1075_v37  ;;  %3018 = vmatmul.msk.f32.gmra.mxu2 %vm958_vm1, %v1414_v59  ;;  %v3228_v40 = vunpack.i.l.bf16 %v3227_v29  ;;  %v3229_v41 = vunpack.i.h.bf16 %v3227_v29 }
 0x1c7   : > { %2068 = vmatpush.msrb.mxu0 %v1989_v5  ;;  %3162 = vmatpush.msra.mxu1 %v1990_v2 }
 0x1c8   : > { %1270 = vst.msk [vmem:[#allocation2 + $0xb1] sm:$0xff] %vm958_vm1, %v1212_v61  ;;  %v1871_v48 = vsel %vm958_vm1, %v1278_v43, %v3228_v40  ;;  %v1872_v63 = vsel %vm958_vm1, %v4223_v31, %v3229_v41 }
 0x1c9   : > { %3356 = vrot.lane.b32.xlu1 %v3355_v39, %s3595_s17  ;;  %2069 = vmatpush.msrb.mxu0 %v1988_v16 }
 0x1ca   : > { %3361 = vrot.lane.b32.xlu2 %v3360_v4, %s3596_s8  ;;  %v476_v11 = vpop.permute.xlu0 %475  ;;  %3163 = vmatpush.msra.mxu1 %v1989_v5 }
 0x1cb   : > { %v540_v9 = vpop.permute.xlu1 %539  ;;  %v957_v18 = vsel %vm941_vm0, %v4142_v21, %v476_v11  ;;  %2070 = vmatpush.msrb.mxu0 %v1987_v17 }
 0x1cc   : > { %v974_v25 = vsel %vm958_vm1, %v957_v18, %v540_v9  ;;  %3164 = vmatpush.msra.mxu1 %v1988_v16 }
 0x1cd   : > { %2071 = vmatpush.msrb.mxu0 %v1986_v20  ;;  %v991_v21 = vsel %vm975_vm2, %v974_v25, %v604_v50  ;;  %vm2293_vm2 = vcmask 1045509  }
 0x1ce   : > { %3165 = vmatpush.msra.mxu1 %v1987_v17 }
 0x1cf   : > { %v1319_v24 = vld [vmem:[#allocation2 + $0xb2] sm:$0xff]  ;;  %2135 = vmatpush.msra.mxu0 %v4121_v6 }
 0x1d0   : > { %v1303_v42 = vld [vmem:[#allocation2 + $0xb1] sm:$0xff]  ;;  %v3370_v51 = vpack.i.bf16 %v1319_v24, %v1318_v10  ;;  %3166 = vmatpush.msra.mxu1 %v1986_v20 }
 0x1d1   : > { %v3365_v14 = vpack.i.bf16 %v1303_v42, %v1302_v19  ;;  %2136 = vmatpush.msra.mxu0 %v4127_v7  ;;  %v3242_v7 = vpop.permute.xlu2 %3241  ;;  %v4423_v50 = vld [vmem:[#allocation2 + $0xb0] sm:$0xff] }
 0x1d2   : > { %v668_v27 = vpop.permute.xlu0 %667  ;;  %3371 = vrot.lane.b32.xlu1 %v3370_v51, %s5098_s22  ;;  %v3243_v39 = vunpack.i.l.bf16 %v3242_v7  ;;  %v3244_v18 = vunpack.i.h.bf16 %v3242_v7 }
 0x1d3   : > { %v732_v26 = vpop.permute.xlu1 %731  ;;  %3366 = vrot.lane.b32.xlu0 %v3365_v14, %s3591_s23  ;;  %v1008_v28 = vsel %vm992_vm3, %v991_v21, %v668_v27 }
 0x1d4   : > { %v1025_v30 = vsel %vm1009_vm4, %v1008_v28, %v732_v26  ;;  %vm2297_vm4 = vcmask 1047559  }
 0x1d5   : > { %v1042_v35 = vsel %vm1026_vm5, %v1025_v30, %v796_v15 }
 0x1d9   : > { %v3257_v1 = vpop.permute.xlu2 %3256 }
 0x1da   : > { %v1183_v12 = vpop.f32.mrf.mxu0  ;;  %v3258_v11 = vunpack.i.l.bf16 %v3257_v1  ;;  %v3259_v29 = vunpack.i.h.bf16 %v3257_v1 }
 0x1db   : > { %v924_v32 = vpop.permute.xlu1 %923  ;;  %v860_v33 = vpop.permute.xlu0 %859  ;;  %v1184_v56 = vadd.f32 %v4052_v47, %v1183_v12 }
 0x1dc   : > { %v1059_v36 = vsel %vm1043_vm6, %v1042_v35, %v860_v33 }
 0x1dd   : > { %v1076_v38 = vsel %vm1060_vm7, %v1059_v36, %v924_v32  ;;  %v1213_v6 = vmax.f32 %v1184_v56, 0.0 }
 0x1de   : > { %3010 = vmatmul.msk.f32.gmra.mxu0 %vm1090_vm8, %v1076_v38 }
 0x1df   : > { %1271 = vst.msk [vmem:[#allocation2 + $0xc1] sm:$0xff] %vm958_vm1, %v1213_v6 }
 0x1e1   : > { %v3272_v30 = vpop.permute.xlu2 %3271 }
 0x1e2   : > { %v3273_v38 = vunpack.i.l.bf16 %v3272_v30 }
 0x1e3   : > { %v3237_v23 = vpop.permute.xlu1 %3236  ;;  %v3232_v44 = vpop.permute.xlu0 %3231 }
 0x1e4   : > { %v3233_v46 = vunpack.i.l.bf16 %v3232_v44  ;;  %v3238_v49 = vunpack.i.l.bf16 %v3237_v23  ;;  %v3234_v52 = vunpack.i.h.bf16 %v3232_v44  ;;  %v3239_v0 = vunpack.i.h.bf16 %v3237_v23 }
 0x1e6   : > { %v1887_v53 = vsel %vm992_vm3, %v1871_v48, %v3233_v46  ;;  %v4426_v54 = vld [vmem:[#allocation2 + $0xc2] sm:$0xff]  ;;  %v1888_v2 = vsel %vm992_vm3, %v1872_v63, %v3234_v52 }
 0x1e7   : > { %v1351_v57 = vld [vmem:[#allocation2 + $0xc1] sm:$0xff]  ;;  %3019 = vmatmul.msk.f32.gmra.mxu2 %vm958_vm1, %v4426_v54  ;;  %v3385_v59 = vpack.i.bf16 %v4426_v54, %v1319_v24  ;;  %v1903_v37 = vsel %vm1026_vm5, %v1887_v53, %v3238_v49  ;;  %v1904_v15 = vsel %vm1026_vm5, %v1888_v2, %v3239_v0  ;;  %v3274_v0 = vunpack.i.h.bf16 %v3272_v30 }
 0x1e8   : > { %v4428_v34 = vld [vmem:[#allocation2 + $0xc0] sm:$0xff]  ;;  %v3380_v62 = vpack.i.bf16 %v1351_v57, %v1303_v42  ;;  %v1919_v31 = vsel %vm1060_vm7, %v1903_v37, %v3243_v39  ;;  %v1920_v24 = vsel %vm1060_vm7, %v1904_v15, %v3244_v18 }
 0x1e9   : > { %v3375_v60 = vpack.i.bf16 %v4428_v34, %v4423_v50  ;;  %3386 = vrot.lane.b32.xlu1 %v3385_v59, %s3597_s9  ;;  %v3287_v52 = vpop.permute.xlu2 %3286 }
 0x1ea   : > { %3381 = vrot.lane.b32.xlu0 %v3380_v62, %s3592_s29  ;;  %v3288_v62 = vunpack.i.l.bf16 %v3287_v52  ;;  %v3289_v15 = vunpack.i.h.bf16 %v3287_v52 }
 0x1eb   : > { %v3252_v61 = vpop.permute.xlu1 %3251  ;;  %3376 = vrot.lane.b32.xlu2 %v3375_v60, %s3589_s21  ;;  %v3247_v5 = vpop.permute.xlu0 %3246 }
 0x1ec   : > { %v3253_v4 = vunpack.i.l.bf16 %v3252_v61  ;;  %v3248_v9 = vunpack.i.l.bf16 %v3247_v5  ;;  %v3249_v16 = vunpack.i.h.bf16 %v3247_v5  ;;  %v3254_v20 = vunpack.i.h.bf16 %v3252_v61 }
 0x1ee   : > { %v1936_v17 = vsel %vm1935_vm10, %v1919_v31, %v3248_v9  ;;  %v1937_v51 = vsel %vm1935_vm10, %v1920_v24, %v3249_v16 }
 0x1ef   : > { %v1953_v10 = vsel %vm1952_vm11, %v1936_v17, %v3253_v4  ;;  %v1954_v28 = vsel %vm1952_vm11, %v1937_v51, %v3254_v20 }
 0x1f0   : > { %v1970_v19 = vsel %vm1969_vm12, %v1953_v10, %v3258_v11  ;;  %v1971_v35 = vsel %vm1969_vm12, %v1954_v28, %v3259_v29 }
 0x1f1   : > { %2072 = vmatmul.f32.vlgmr.msrb.gmra.mxu0 %v1970_v19  ;;  %v1186_v42 = vpop.f32.mrf.mxu0  ;;  %v3302_v10 = vpop.permute.xlu2 %3301 }
 0x1f2   : > { %v1187_v14 = vadd.f32 %v4052_v47, %v1186_v42  ;;  %v3304_v29 = vunpack.i.h.bf16 %v3302_v10 }
 0x1f3   : > { %v3267_v25 = vpop.permute.xlu1 %3266  ;;  %v3262_v26 = vpop.permute.xlu0 %3261 }
 0x1f4   : > { %v3263_v27 = vunpack.i.l.bf16 %v3262_v26  ;;  %v1214_v21 = vmax.f32 %v1187_v14, 0.0  ;;  %v3268_v32 = vunpack.i.l.bf16 %v3267_v25  ;;  %v3264_v6 = vunpack.i.h.bf16 %v3262_v26 }
 0x1f5   : > { %v3269_v41 = vunpack.i.h.bf16 %v3267_v25 }
 0x1f6   : > { %1272 = vst.msk [vmem:[#allocation2 + $0xd1] sm:$0xff] %vm958_vm1, %v1214_v21  ;;  %v1873_v33 = vsel %vm958_vm1, %v4219_v3, %v3263_v27  ;;  %v1874_v53 = vsel %vm958_vm1, %v4235_v45, %v3264_v6 }
 0x1f7   : > { %v1889_v12 = vsel %vm992_vm3, %v1873_v33, %v3268_v32  ;;  %v1890_v60 = vsel %vm992_vm3, %v1874_v53, %v3269_v41  ;;  %v3303_v33 = vunpack.i.l.bf16 %v3302_v10 }
 0x1f8   : > { %v1905_v23 = vsel %vm1026_vm5, %v1889_v12, %v3273_v38  ;;  %v1906_v2 = vsel %vm1026_vm5, %v1890_v60, %v3274_v0 }
 0x1f9   : > { %2075 = vmatmul.f32.gmra.mxu0 %v1971_v35  ;;  %v3317_v6 = vpop.permute.xlu2 %3316 }
 0x1fb   : > { %v3282_v36 = vpop.permute.xlu1 %3281  ;;  %v3277_v56 = vpop.permute.xlu0 %3276 }
 0x1fc   : > { %v3278_v7 = vunpack.i.l.bf16 %v3277_v56  ;;  %v3283_v40 = vunpack.i.l.bf16 %v3282_v36  ;;  %v3279_v63 = vunpack.i.h.bf16 %v3277_v56  ;;  %v3284_v1 = vunpack.i.h.bf16 %v3282_v36 }
 0x1fd   : > { %v1416_v43 = vld [vmem:[#allocation2 + $0xd2] sm:$0xff] }
 0x1fe   : > { %v1305_v44 = vld [vmem:[#allocation2 + $0xd1] sm:$0xff]  ;;  %v1921_v3 = vsel %vm1060_vm7, %v1905_v23, %v3278_v7  ;;  %3020 = vmatmul.msk.f32.gmra.mxu2 %vm958_vm1, %v1416_v43  ;;  %v1922_v5 = vsel %vm1060_vm7, %v1906_v2, %v3279_v63  ;;  %v3405_v31 = vpack.i.bf16 %v1416_v43, %v4426_v54 }
 0x1ff   : > { %v4457_v46 = vld [vmem:[#allocation2 + $0xd0] sm:$0xff]  ;;  %v3400_v48 = vpack.i.bf16 %v1305_v44, %v1351_v57  ;;  %v1938_v59 = vsel %vm1935_vm10, %v1921_v3, %v3283_v40  ;;  %v4504_v40 = vld [vmem:[%s5083_s2] ss:$0 sm:$0xff] }
 0x200   : > { %v3390_v49 = vpack.i.bf16 %v4457_v46, %v4428_v34  ;;  %v1955_v45 = vsel %vm1952_vm11, %v1938_v59, %v3288_v62 }
 0x201   : > { %3401 = vrot.lane.b32.xlu1 %v3400_v48, %s3591_s23  ;;  %3396 = vrot.lane.b32.xlu0 %v3400_v48, %s3596_s8 }
 0x202   : > { %3391 = vrot.lane.b32.xlu2 %v3390_v49, %s3595_s17 }
 0x203   : > { %v3292_v57 = vpop.permute.xlu0 %3291  ;;  %v1189_v61 = vpop.f32.mrf.mxu0 }
 0x204   : > { %v3293_v37 = vunpack.i.l.bf16 %v3292_v57  ;;  %v1190_v39 = vadd.f32 %v4052_v47, %v1189_v61  ;;  %v3294_v11 = vunpack.i.h.bf16 %v3292_v57  ;;  %v1939_v47 = vsel %vm1935_vm10, %v1922_v5, %v3284_v1  ;;  %v3297_v16 = vpop.permute.xlu1 %3296  ;;  %v3332_v2 = vpop.permute.xlu2 %3331 }
 0x205   : > { %v1956_v17 = vsel %vm1952_vm11, %v1939_v47, %v3289_v15  ;;  %v3299_v54 = vunpack.i.h.bf16 %v3297_v16  ;;  %v3298_v14 = vunpack.i.l.bf16 %v3297_v16 }
 0x206   : > { %v1972_v4 = vsel %vm1969_vm12, %v1955_v45, %v3293_v37  ;;  %v1215_v9 = vmax.f32 %v1190_v39, 0.0  ;;  %v1973_v18 = vsel %vm1969_vm12, %v1956_v17, %v3294_v11  ;;  %v3333_v11 = vunpack.i.l.bf16 %v3332_v2 }
 0x207   : > { %2078 = vmatmul.f32.gmra.mxu0 %v1972_v4  ;;  %v1875_v27 = vsel %vm958_vm1, %v4250_v58, %v3299_v54  ;;  %v1876_v30 = vsel %vm958_vm1, %v4266_v13, %v3298_v14 }
 0x208   : > { %1273 = vst.msk [vmem:[#allocation2 + $0xe1] sm:$0xff] %vm958_vm1, %v1215_v9  ;;  %v1891_v12 = vsel %vm992_vm3, %v1875_v27, %v3304_v29  ;;  %v1892_v56 = vsel %vm992_vm3, %v1876_v30, %v3303_v33 }
 0x20a   : > { %3406 = vrot.lane.b32.xlu2 %v3405_v31, %s5098_s22 }
 0x20b   : > { %v3307_v26 = vpop.permute.xlu0 %3306 }
 0x20c   : > { %v3312_v21 = vpop.permute.xlu1 %3311  ;;  %v3309_v28 = vunpack.i.h.bf16 %v3307_v26  ;;  %v3308_v32 = vunpack.i.l.bf16 %v3307_v26 }
 0x20d   : > { %v3314_v35 = vunpack.i.h.bf16 %v3312_v21  ;;  %v3313_v36 = vunpack.i.l.bf16 %v3312_v21 }
 0x20e   : > { %v1907_v38 = vsel %vm1026_vm5, %v1891_v12, %v3309_v28  ;;  %v1908_v7 = vsel %vm1026_vm5, %v1892_v56, %v3308_v32 }
 0x20f   : > { %2081 = vmatmul.f32.gmra.mxu0 %v1973_v18  ;;  %v4481_v19 = vld [vmem:[#allocation2 + $0xe2] sm:$0xff]  ;;  %v1923_v23 = vsel %vm1060_vm7, %v1907_v38, %v3314_v35  ;;  %v1924_v48 = vsel %vm1060_vm7, %v1908_v7, %v3313_v36 }
 0x210   : > { %v1353_v20 = vld [vmem:[#allocation2 + $0xe1] sm:$0xff]  ;;  %3021 = vmatmul.msk.f32.gmra.mxu2 %vm958_vm1, %v4481_v19  ;;  %v3420_v51 = vpack.i.bf16 %v4481_v19, %v1416_v43  ;;  %v3319_v43 = vunpack.i.h.bf16 %v3317_v6 }
 0x211   : > { %v4483_v24 = vld [vmem:[#allocation2 + $0xe0] sm:$0xff]  ;;  %v3415_v42 = vpack.i.bf16 %v1353_v20, %v1305_v44  ;;  %v3318_v44 = vunpack.i.l.bf16 %v3317_v6 }
 0x212   : > { %v3410_v25 = vpack.i.bf16 %v4483_v24, %v4457_v46  ;;  %3421 = vrot.lane.b32.xlu2 %v3420_v51, %s3597_s9  ;;  %v1940_v60 = vsel %vm1935_vm10, %v1923_v23, %v3319_v43 }
 0x213   : > { %3416 = vrot.lane.b32.xlu1 %v3415_v42, %s3592_s29  ;;  %v1941_v57 = vsel %vm1935_vm10, %v1924_v48, %v3318_v44  ;;  %v3334_v42 = vunpack.i.h.bf16 %v3332_v2 }
 0x214   : > { %3411 = vrot.lane.b32.xlu0 %v3410_v25, %s3589_s21 }
 0x215   : > { %v1878_v28 = vsel %vm958_vm1, %v4314_v55, %v3334_v42 }
 0x21a   : > { %v1192_v58 = vpop.f32.mrf.mxu0 }
 0x21b   : > { %v1193_v13 = vadd.f32 %v4504_v40, %v1192_v58 }
 0x21c   : > { %v3327_v41 = vpop.permute.xlu1 %3326  ;;  %v3347_v31 = vpop.permute.xlu2 %3346 }
 0x21d   : > { %v3322_v3 = vpop.permute.xlu0 %3321  ;;  %v1216_v49 = vmax.f32 %v1193_v13, 0.0  ;;  %v3329_v52 = vunpack.i.h.bf16 %v3327_v41  ;;  %v3328_v53 = vunpack.i.l.bf16 %v3327_v41  ;;  %v3349_v36 = vunpack.i.h.bf16 %v3347_v31 }
 0x21e   : > { %v3324_v59 = vunpack.i.h.bf16 %v3322_v3  ;;  %v3323_v62 = vunpack.i.l.bf16 %v3322_v3 }
 0x21f   : > { %1274 = vst.msk [vmem:[#allocation2 + $0xf1] sm:$0xff] %vm958_vm1, %v1216_v49 }
 0x220   : > { %v1957_v63 = vsel %vm1952_vm11, %v1940_v60, %v3324_v59  ;;  %v1958_v37 = vsel %vm1952_vm11, %v1941_v57, %v3323_v62 }
 0x221   : > { %v1974_v0 = vsel %vm1969_vm12, %v1957_v63, %v3329_v52  ;;  %v1975_v61 = vsel %vm1969_vm12, %v1958_v37, %v3328_v53 }
 0x222   : > { %2084 = vmatmul.f32.gmra.mxu0 %v1974_v0  ;;  %2087 = vmatmul.f32.vlgmr.msra.gmra.mxu1 %v1975_v61 }
 0x224   : > { %v3362_v27 = vpop.permute.xlu2 %3361 }
 0x225   : > { %v3337_v9 = vpop.permute.xlu0 %3336  ;;  %v3363_v33 = vunpack.i.l.bf16 %v3362_v27  ;;  %v3364_v52 = vunpack.i.h.bf16 %v3362_v27 }
 0x226   : > { %v1418_v39 = vld [vmem:[#allocation2 + $0xf2] sm:$0xff]  ;;  %v3338_v15 = vunpack.i.l.bf16 %v3337_v9  ;;  %v3339_v51 = vunpack.i.h.bf16 %v3337_v9 }
 0x227   : > { %v1402_v45 = vld [vmem:[#allocation2 + $0xf1] sm:$0xff]  ;;  %3022 = vmatmul.msk.f32.gmra.mxu2 %vm958_vm1, %v1418_v39  ;;  %v3440_v47 = vpack.i.bf16 %v1418_v39, %v4481_v19  ;;  %v3348_v19 = vunpack.i.l.bf16 %v3347_v31 }
 0x228   : > { %v4516_v1 = vld [vmem:[#allocation2 + $0xf0] sm:$0xff]  ;;  %v3430_v4 = vpack.i.bf16 %v1402_v45, %v1353_v20  ;;  %v1894_v30 = vsel %vm992_vm3, %v1878_v28, %v3339_v51 }
 0x229   : > { %v3425_v5 = vpack.i.bf16 %v4516_v1, %v4483_v24 }
 0x22a   : > { %3011 = vmatmul.msk.f32.vlgmr.msra.gmra.mxu0 %vm958_vm1, %v4238_v8  ;;  %3431 = vrot.lane.b32.xlu1 %v3430_v4, %s3596_s8  ;;  %v1877_v8 = vsel %vm958_vm1, %v4292_v22, %v3333_v11  ;;  %v1286_v11 = vld [vmem:[#allocation2 + $0xa0] sm:$0xff] }
 0x22b   : > { %3426 = vrot.lane.b32.xlu0 %v3425_v5, %s3595_s17  ;;  %3436 = vrot.lane.b32.xlu2 %v3430_v4, %s3591_s23  ;;  %v1893_v54 = vsel %vm992_vm3, %v1877_v8, %v3338_v15 }
 0x231   : > { %v1195_v16 = vpop.f32.mrf.mxu0 }
 0x232   : > { %v1196_v17 = vadd.f32 %v4504_v40, %v1195_v16  ;;  %v3352_v14 = vpop.permute.xlu0 %3351 }
 0x233   : > { %3441 = vrot.lane.b32.xlu0 %v3440_v47, %s5098_s22  ;;  %v3342_v18 = vpop.permute.xlu1 %3341  ;;  %v3353_v29 = vunpack.i.l.bf16 %v3352_v14  ;;  %v3354_v41 = vunpack.i.h.bf16 %v3352_v14 }
 0x234   : > { %v3343_v10 = vunpack.i.l.bf16 %v3342_v18  ;;  %v1217_v20 = vmax.f32 %v1196_v17, 0.0  ;;  %v3344_v26 = vunpack.i.h.bf16 %v3342_v18 }
 0x236   : > { %1275 = vst.msk [vmem:[#allocation2 + $0x101] sm:$0xff] %vm958_vm1, %v1217_v20  ;;  %v1909_v25 = vsel %vm1026_vm5, %v1893_v54, %v3343_v10  ;;  %v1910_v35 = vsel %vm1026_vm5, %v1894_v30, %v3344_v26  ;;  %v1406_v26 = vld [vmem:[#allocation2 + $0x131] sm:$0xff] }
 0x237   : > { %v1925_v21 = vsel %vm1060_vm7, %v1909_v25, %v3348_v19  ;;  %v1926_v44 = vsel %vm1060_vm7, %v1910_v35, %v3349_v36 }
 0x238   : > { %v1942_v12 = vsel %vm1935_vm10, %v1925_v21, %v3353_v29  ;;  %v1943_v3 = vsel %vm1935_vm10, %v1926_v44, %v3354_v41  ;;  %v1390_v29 = vld [vmem:[#allocation2 + $0x130] sm:$0xff] }
 0x23b   : > { %v3357_v22 = vpop.permute.xlu1 %3356 }
 0x23c   : > { %v3358_v32 = vunpack.i.l.bf16 %v3357_v22  ;;  %v3359_v43 = vunpack.i.h.bf16 %v3357_v22 }
 0x23d   : > { %v1419_v56 = vld [vmem:[#allocation2 + $0x102] sm:$0xff] }
 0x23e   : > { %v1959_v38 = vsel %vm1952_vm11, %v1942_v12, %v3358_v32  ;;  %v4541_v6 = vld [vmem:[#allocation2 + $0x100] sm:$0xff]  ;;  %3023 = vmatmul.msk.f32.gmra.mxu2 %vm958_vm1, %v1419_v56  ;;  %v3455_v13 = vpack.i.bf16 %v1419_v56, %v1418_v39  ;;  %v1960_v49 = vsel %vm1952_vm11, %v1943_v3, %v3359_v43  ;;  %v3598_v39 = vmov 0  }
 0x23f   : > { %v1355_v7 = vld [vmem:[#allocation2 + $0x101] sm:$0xff]  ;;  %v1976_v55 = vsel %vm1969_vm12, %v1959_v38, %v3363_v33  ;;  %v3445_v58 = vpack.i.bf16 %v4541_v6, %v4516_v1  ;;  %v1977_v62 = vsel %vm1969_vm12, %v1960_v49, %v3364_v52  ;;  %3505 = vset.pattern.permute.xlu2 %v3598_v39  ;;  %3506 = vset.pattern.permute.xlu0 %v3598_v39  ;;  %v2141_v52 = vpop.f32.mrf.mxu2 }
 0x240   : > { %v3450_v23 = vpack.i.bf16 %v1355_v7, %v1402_v45  ;;  %2090 = vmatmul.f32.gmra.mxu1 %v1976_v55  ;;  %3456 = vrot.lane.b32.xlu0 %v3455_v13, %s3597_s9 }
 0x241   : > { %3446 = vrot.lane.b32.xlu1 %v3445_v58, %s3589_s21 }
 0x242   : > { %3451 = vrot.lane.b32.xlu2 %v3450_v23, %s3592_s29  ;;  %3507 = vset.pattern.permute.xlu1 %v3598_v39 }
 0x243   : > { %v1198_v48 = vpop.f32.mrf.mxu0 }
 0x244   : > { %v1199_v53 = vadd.f32 %v4504_v40, %v1198_v48  ;;  %v3372_v9 = vpop.permute.xlu1 %3371 }
 0x245   : > { %v3367_v5 = vpop.permute.xlu0 %3366  ;;  %v3373_v47 = vunpack.i.l.bf16 %v3372_v9  ;;  %v3377_v18 = vpop.permute.xlu2 %3376  ;;  %v3374_v22 = vunpack.i.h.bf16 %v3372_v9 }
 0x246   : > { %v1218_v59 = vmax.f32 %v1199_v53, 0.0  ;;  %v3368_v31 = vunpack.i.l.bf16 %v3367_v5  ;;  %v3378_v51 = vunpack.i.l.bf16 %v3377_v18  ;;  %v3369_v14 = vunpack.i.h.bf16 %v3367_v5 }
 0x247   : > { %v3379_v58 = vunpack.i.h.bf16 %v3377_v18 }
 0x248   : > { %2093 = vmatmul.f32.gmra.mxu1 %v1977_v62  ;;  %1276 = vst.msk [vmem:[#allocation2 + $0x111] sm:$0xff] %vm958_vm1, %v1218_v59  ;;  %v1879_v10 = vsel %vm958_vm1, %v1286_v11, %v3368_v31  ;;  %v1880_v32 = vsel %vm958_vm1, %v4423_v50, %v3369_v14  ;;  %v4590_v50 = vld [vmem:[%s5085_s4] ss:$0 sm:$0xff] }
 0x249   : > { %v1895_v42 = vsel %vm992_vm3, %v1879_v10, %v3373_v47 }
 0x24a   : > { %v1911_v21 = vsel %vm1026_vm5, %v1895_v42, %v3378_v51 }
 0x24f   : > { %v1420_v60 = vld [vmem:[#allocation2 + $0x112] sm:$0xff] }
 0x250   : > { %v4556_v63 = vld [vmem:[#allocation2 + $0x110] sm:$0xff]  ;;  %3024 = vmatmul.msk.f32.gmra.mxu2 %vm958_vm1, %v1420_v60  ;;  %v3475_v61 = vpack.i.bf16 %v1420_v60, %v1419_v56  ;;  %v1896_v56 = vsel %vm992_vm3, %v1880_v32, %v3374_v22 }
 0x251   : > { %v1309_v57 = vld [vmem:[#allocation2 + $0x111] sm:$0xff]  ;;  %v3460_v0 = vpack.i.bf16 %v4556_v63, %v4541_v6  ;;  %v1912_v44 = vsel %vm1026_vm5, %v1896_v56, %v3379_v58 }
 0x252   : > { %v3470_v37 = vpack.i.bf16 %v1309_v57, %v1355_v7 }
 0x253   : > { %3461 = vrot.lane.b32.xlu1 %v3460_v0, %s3595_s17 }
 0x254   : > { %3471 = vrot.lane.b32.xlu0 %v3470_v37, %s3591_s23  ;;  %3466 = vrot.lane.b32.xlu2 %v3470_v37, %s3596_s8 }
 0x25b   : > { %v1201_v45 = vpop.f32.mrf.mxu0  ;;  %3476 = vrot.lane.b32.xlu1 %v3475_v61, %s5098_s22  ;;  %v3387_v25 = vpop.permute.xlu1 %3386 }
 0x25c   : > { %v1202_v2 = vadd.f32 %v4504_v40, %v1201_v45  ;;  %v3382_v8 = vpop.permute.xlu0 %3381  ;;  %v3388_v27 = vunpack.i.l.bf16 %v3387_v25  ;;  %v3392_v33 = vpop.permute.xlu2 %3391  ;;  %v3389_v43 = vunpack.i.h.bf16 %v3387_v25 }
 0x25d   : > { %v3383_v19 = vunpack.i.l.bf16 %v3382_v8  ;;  %v3393_v38 = vunpack.i.l.bf16 %v3392_v33  ;;  %v3384_v7 = vunpack.i.h.bf16 %v3382_v8  ;;  %v2144_v45 = vpop.f32.mrf.mxu2 }
 0x25e   : > { %v1219_v4 = vmax.f32 %v1202_v2, 0.0 }
 0x25f   : > { %v1927_v30 = vsel %vm1060_vm7, %v1911_v21, %v3383_v19  ;;  %v1928_v48 = vsel %vm1060_vm7, %v1912_v44, %v3384_v7 }
 0x260   : > { %1277 = vst.msk [vmem:[#allocation2 + $0x121] sm:$0xff] %vm958_vm1, %v1219_v4  ;;  %v1944_v36 = vsel %vm1935_vm10, %v1927_v30, %v3388_v27  ;;  %v1945_v62 = vsel %vm1935_vm10, %v1928_v48, %v3389_v43 }
 0x261   : > { %v1961_v23 = vsel %vm1952_vm11, %v1944_v36, %v3393_v38 }
 0x265   : > { %v2147_v31 = vpop.f32.mrf.mxu2 }
 0x267   : > { %v1421_v15 = vld [vmem:[#allocation2 + $0x122] sm:$0xff] }
 0x268   : > { %v1357_v16 = vld [vmem:[#allocation2 + $0x121] sm:$0xff]  ;;  %3025 = vmatmul.msk.f32.gmra.mxu2 %vm958_vm1, %v1421_v15  ;;  %v3490_v40 = vpack.i.bf16 %v1421_v15, %v1420_v60  ;;  %v3394_v60 = vunpack.i.h.bf16 %v3392_v33  ;;  %v3407_v15 = vpop.permute.xlu2 %3406 }
 0x269   : > { %v1341_v17 = vld [vmem:[#allocation2 + $0x120] sm:$0xff]  ;;  %v3485_v20 = vpack.i.bf16 %v1357_v16, %v1309_v57  ;;  %v3500_v35 = vpack.i.bf16 %v1406_v26, %v1357_v16  ;;  %v3408_v8 = vunpack.i.l.bf16 %v3407_v15  ;;  %v3409_v14 = vunpack.i.h.bf16 %v3407_v15 }
 0x26a   : > { %v3480_v54 = vpack.i.bf16 %v1341_v17, %v4556_v63  ;;  %3491 = vrot.lane.b32.xlu1 %v3490_v40, %s3597_s9  ;;  %v3495_v12 = vpack.i.bf16 %v1390_v29, %v1341_v17  ;;  %v1962_v57 = vsel %vm1952_vm11, %v1945_v62, %v3394_v60  ;;  %s272_s9 = sand.u32 1, %s3576_s25  }
 0x26b   : > { %3486 = vrot.lane.b32.xlu0 %v3485_v20, %s3592_s29  ;;  %s2896_s19 = sshll.u32 %s272_s9, 9 }
 0x26c   : > { %3481 = vrot.lane.b32.xlu2 %v3480_v54, %s3589_s21  ;;  %s4877_s13 = scalar_lea.vmem [#allocation3], %s2896_s19  ;;  %s3150_s21 = sshll.u32 %s3662_s28, 9 }
 0x26d   : > { %v2150_v56 = vpop.f32.mrf.mxu2  ;;  %s2826_s22 = scalar_lea.hbm %s5088_s7, %s3150_s21  ;;  %s2814_s19 = scalar_lea.sflag [#allocation4], %s272_s9 }
 0x26e   : > { %v4578_v28 = vpop.f32.mrf.mxu0 }
 0x26f   : > { %v2074_v44 = vadd.f32 %v4590_v50, %v4578_v28 }
 0x270   : > { %v3422_v25 = vpop.permute.xlu2 %3421 }
 0x271   : > { %v3423_v21 = vunpack.i.l.bf16 %v3422_v25 }
 0x273   : > { %3501 = vrot.lane.b32.xlu0 %v3500_v35, %s3596_s8  ;;  %v3397_v55 = vpop.permute.xlu0 %3396  ;;  %v3402_v4 = vpop.permute.xlu1 %3401  ;;  %s2829_s8 = sshll.u32 %s2826_s22, 4  ;;  %s2830_s8 = int_to_ptr.hbm [resolvable:$true] %s2829_s8 }
 0x274   : > { %3496 = vrot.lane.b32.xlu2 %v3495_v12, %s3595_s17  ;;  %v3398_v13 = vunpack.i.l.bf16 %v3397_v55  ;;  %v3399_v59 = vunpack.i.h.bf16 %v3397_v55  ;;  %v3403_v47 = vunpack.i.l.bf16 %v3402_v4  ;;  %v3404_v40 = vunpack.i.h.bf16 %v3402_v4  ;;  %s2827_s17 = sshll.u32 %s4877_s13, 4  ;;  %s3536_s16 = sshra.s32 %s2830_s8, 4  ;;  %s2828_s17 = int_to_ptr.vmem [resolvable:$true] %s2827_s17  ;;  %s3537_s16 = int_to_ptr.hbm [resolvable:$true] %s3536_s16 }
 0x275   : > { %v2153_v62 = vpop.f32.mrf.mxu2  ;;  %s3538_s28 = scalar_lea.hbm %s3537_s16, 512  ;;  %p3543_p0 = scmp.lt.s32.totalorder %s3537_s16, %s5088_s7 }
 0x276   : > { %v2076_v41 = vpop.f32.mrf.mxu0  ;;  %v1978_v3 = vsel %vm1969_vm12, %v1961_v23, %v3398_v13  ;;  %v1979_v0 = vsel %vm1969_vm12, %v1962_v57, %v3399_v59  ;;  %v1881_v18 = vsel %vm958_vm1, %v4428_v34, %v3403_v47  ;;  %v1882_v19 = vsel %vm958_vm1, %v4457_v46, %v3404_v40  ;;  %p3539_p11 = scmp.ne.s32.totalorder %s3537_s16, %s3538_s28  ;;  %p3544_p1 = scmp.lt.s32.totalorder %s3542_s15, %s3538_s28 }
 0x277   : > { %v2077_v49 = vadd.f32 %v4590_v50, %v2076_v41  ;;  %2096 = vmatmul.f32.gmra.mxu1 %v1978_v3  ;;  %v1897_v54 = vsel %vm992_vm3, %v1881_v18, %v3408_v8  ;;  %v1898_v30 = vsel %vm992_vm3, %v1882_v19, %v3409_v14  ;;  %v3424_v13 = vunpack.i.h.bf16 %v3422_v25 }
 0x278   : > { %p3540_p12 = pnand %p3539_p11, %p3679_p5  ;;  %p3545_p2 = por %p3544_p1, %p3543_p0 }
 0x279   : > { %v4597_v53 = vadd.f32 %v2141_v52, %v2077_v49 }
 0x27a   : > { %p3541_p13 = pneg %p3540_p12 }
 0x27c   : > { %2223 = vperm.xlu2 %3505, %v4597_v53   ;;  %p3546_p3 = pnand %p3545_p2, %p3541_p13 }
 0x27d   : > { %v2156_v47 = vpop.f32.mrf.mxu2 }
 0x27f   : > { %2099 = vmatmul.f32.gmra.mxu1 %v1979_v0 }
 0x284   : > { %v2079_v37 = vpop.f32.mrf.mxu0 }
 0x285   : > { %v2080_v61 = vadd.f32 %v4590_v50, %v2079_v37  ;;  %v3417_v17 = vpop.permute.xlu1 %3416  ;;  %v3437_v57 = vpop.permute.xlu2 %3436 }
 0x286   : > { %v3412_v16 = vpop.permute.xlu0 %3411  ;;  %v3418_v20 = vunpack.i.l.bf16 %v3417_v17  ;;  %v3419_v22 = vunpack.i.h.bf16 %v3417_v17  ;;  %v3438_v28 = vunpack.i.l.bf16 %v3437_v57  ;;  %v3439_v18 = vunpack.i.h.bf16 %v3437_v57 }
 0x287   : > { %v4604_v2 = vadd.f32 %v2144_v45, %v2080_v61  ;;  %v3413_v10 = vunpack.i.l.bf16 %v3412_v16  ;;  %v3414_v51 = vunpack.i.h.bf16 %v3412_v16  ;;  %v3599_v61 = vmov 1  }
 0x288   : > { %v1883_v15 = vsel %vm958_vm1, %v4483_v24, %v3438_v28  ;;  %v1884_v19 = vsel %vm958_vm1, %v4516_v1, %v3439_v18 }
 0x289   : > { %2226 = vperm.xlu0 %3506, %v4604_v2   ;;  %v1913_v42 = vsel %vm1026_vm5, %v1897_v54, %v3413_v10  ;;  %v1914_v33 = vsel %vm1026_vm5, %v1898_v30, %v3414_v51 }
 0x28a   : > { %v1929_v27 = vsel %vm1060_vm7, %v1913_v42, %v3418_v20  ;;  %v1930_v58 = vsel %vm1060_vm7, %v1914_v33, %v3419_v22 }
 0x28b   : > { %v1946_v12 = vsel %vm1935_vm10, %v1929_v27, %v3423_v21  ;;  %v1947_v43 = vsel %vm1935_vm10, %v1930_v58, %v3424_v13 }
 0x28c   : > { %v2082_v5 = vpop.f32.mrf.mxu0 }
 0x28d   : > { %v2083_v9 = vadd.f32 %v4590_v50, %v2082_v5 }
 0x28f   : > { %v4608_v11 = vadd.f32 %v2147_v31, %v2083_v9 }
 0x291   : > { %2229 = vperm.xlu1 %3507, %v4608_v11  }
 0x29c   : > { %v3432_v26 = vpop.permute.xlu1 %3431  ;;  %v3452_v45 = vpop.permute.xlu2 %3451 }
 0x29d   : > { %v3433_v29 = vunpack.i.l.bf16 %v3432_v26  ;;  %v3427_v34 = vpop.permute.xlu0 %3426  ;;  %v3434_v23 = vunpack.i.h.bf16 %v3432_v26  ;;  %v3453_v8 = vunpack.i.l.bf16 %v3452_v45  ;;  %v3454_v30 = vunpack.i.h.bf16 %v3452_v45 }
 0x29e   : > { %v3428_v32 = vunpack.i.l.bf16 %v3427_v34  ;;  %v3429_v7 = vunpack.i.h.bf16 %v3427_v34 }
 0x29f   : > { %v2085_v35 = vpop.f32.mrf.mxu0  ;;  %v2088_v49 = vpop.f32.mrf.mxu1 }
 0x2a0   : > { %v2086_v36 = vadd.f32 %v4590_v50, %v2085_v35  ;;  %v1963_v46 = vsel %vm1952_vm11, %v1946_v12, %v3428_v32  ;;  %v1964_v41 = vsel %vm1952_vm11, %v1947_v43, %v3429_v7  ;;  %v2089_v59 = vadd.f32 %v4590_v50, %v2088_v49 }
 0x2a1   : > { %v1980_v38 = vsel %vm1969_vm12, %v1963_v46, %v3433_v29  ;;  %v1981_v52 = vsel %vm1969_vm12, %v1964_v41, %v3434_v23  ;;  %v1422_v46 = vld [vmem:[#allocation2 + $0x132] sm:$0xff] }
 0x2a2   : > { %v4624_v55 = vadd.f32 %v2150_v56, %v2086_v36  ;;  %2102 = vmatmul.f32.gmra.mxu1 %v1980_v38  ;;  %v2154_v60 = vadd.f32 %v2153_v62, %v2089_v59  ;;  %3026 = vmatmul.msk.f32.gmra.mxu2 %vm958_vm1, %v1422_v46 }
 0x2a4   : > { %2232 = vperm.xlu2 %3505, %v4624_v55  }
 0x2a5   : > { %v3442_v0 = vpop.permute.xlu0 %3441 }
 0x2a6   : > { %v3443_v4 = vunpack.i.l.bf16 %v3442_v0  ;;  %v3444_v40 = vunpack.i.h.bf16 %v3442_v0 }
 0x2a7   : > { %v2138_v3 = vpop.f32.mrf.mxu0 }
 0x2a8   : > { %v2139_v48 = vadd.f32 %v2138_v3, %v2074_v44  ;;  %v1899_v16 = vsel %vm992_vm3, %v1883_v15, %v3443_v4  ;;  %v1900_v14 = vsel %vm992_vm3, %v1884_v19, %v3444_v40 }
 0x2aa   : > { %2105 = vmatmul.f32.gmra.mxu1 %v1981_v52  ;;  %2220 = vperm.xlu1 %3507, %v2139_v48  }
 0x2ae   : > { %v3467_v42 = vpop.permute.xlu2 %3466 }
 0x2af   : > { %v3468_v21 = vunpack.i.l.bf16 %v3467_v42  ;;  %v3469_v7 = vunpack.i.h.bf16 %v3467_v42 }
 0x2b2   : > { %2235 = vperm.xlu1 %3507, %v2154_v60   ;;  %v3457_v20 = vpop.permute.xlu0 %3456 }
 0x2b3   : > { %v3447_v37 = vpop.permute.xlu1 %3446  ;;  %v3458_v24 = vunpack.i.l.bf16 %v3457_v20  ;;  %v3459_v36 = vunpack.i.h.bf16 %v3457_v20 }
 0x2b4   : > { %v3448_v5 = vunpack.i.l.bf16 %v3447_v37  ;;  %v3449_v54 = vunpack.i.h.bf16 %v3447_v37 }
 0x2b6   : > { %v1915_v10 = vsel %vm1026_vm5, %v1899_v16, %v3448_v5  ;;  %v1916_v29 = vsel %vm1026_vm5, %v1900_v14, %v3449_v54 }
 0x2b7   : > { %v1931_v25 = vsel %vm1060_vm7, %v1915_v10, %v3453_v8  ;;  %v1932_v12 = vsel %vm1060_vm7, %v1916_v29, %v3454_v30 }
 0x2b8   : > { %v1948_v22 = vsel %vm1935_vm10, %v1931_v25, %v3458_v24  ;;  %v1949_v56 = vsel %vm1935_vm10, %v1932_v12, %v3459_v36 }
 0x2ba   : > { %3508 = vset.pattern.permute.xlu1 %v3599_v61 }
 0x2bb   : > { %2545 = vperm.xlu1 %3508, %v2139_v48  }
 0x2bd   : > { %v2091_v9 = vpop.f32.mrf.mxu1 }
 0x2be   : > { %v2092_v31 = vadd.f32 %v4590_v50, %v2091_v9 }
 0x2c0   : > { %v2157_v17 = vadd.f32 %v2156_v47, %v2092_v31 }
 0x2c2   : > { %2238 = vperm.xlu2 %3505, %v2157_v17  }
 0x2c3   : > { %2551 = vperm.xlu1 %3508, %v4604_v2   ;;  %v2159_v2 = vpop.f32.mrf.mxu2 }
 0x2c5   : > { %v3462_v51 = vpop.permute.xlu1 %3461  ;;  %v2094_v27 = vpop.f32.mrf.mxu1 }
 0x2c6   : > { %v3463_v26 = vunpack.i.l.bf16 %v3462_v51  ;;  %v2095_v34 = vadd.f32 %v4590_v50, %v2094_v27  ;;  %v3464_v35 = vunpack.i.h.bf16 %v3462_v51  ;;  %v3472_v13 = vpop.permute.xlu0 %3471  ;;  %v4686_v27 = vld [vmem:[%s5087_s6] sm:$0xff] }
 0x2c7   : > { %v3474_v59 = vunpack.i.h.bf16 %v3472_v13  ;;  %2325 = vmatpush.msra.mxu3 %v4686_v27 }
 0x2c8   : > { %v1965_v32 = vsel %vm1952_vm11, %v1948_v22, %v3463_v26  ;;  %v2160_v33 = vadd.f32 %v2159_v2, %v2095_v34  ;;  %v1966_v38 = vsel %vm1952_vm11, %v1949_v56, %v3464_v35 }
 0x2c9   : > { %v1982_v1 = vsel %vm1969_vm12, %v1965_v32, %v3468_v21  ;;  %v1983_v58 = vsel %vm1969_vm12, %v1966_v38, %v3469_v7  ;;  %v2267_v32 = vlaneseq }
 0x2ca   : > { %2108 = vmatmul.f32.gmra.mxu1 %v1982_v1  ;;  %3509 = vset.pattern.permute.xlu2 %v3599_v61 }
 0x2cb   : > { %2557 = vperm.xlu1 %3508, %v4624_v55   ;;  %2241 = vperm.xlu0 %3506, %v2160_v33   ;;  %v3482_v55 = vpop.permute.xlu2 %3481  ;;  %v2162_v25 = vpop.f32.mrf.mxu2  ;;  %v4694_v36 = vand.u32 127, %v2267_v32 }
 0x2cc   : > { %2548 = vperm.xlu2 %3509, %v4597_v53   ;;  %v3473_v53 = vunpack.i.l.bf16 %v3472_v13  ;;  %v3483_v49 = vunpack.i.l.bf16 %v3482_v55  ;;  %v3484_v9 = vunpack.i.h.bf16 %v3482_v55 }
 0x2cd   : > { %v3477_v23 = vpop.permute.xlu1 %3476 }
 0x2ce   : > { %v3478_v43 = vunpack.i.l.bf16 %v3477_v23  ;;  %v1885_v44 = vsel %vm958_vm1, %v4541_v6, %v3473_v53  ;;  %v1886_v6 = vsel %vm958_vm1, %v4556_v63, %v3474_v59  ;;  %vm2291_vm1 = vcmask 1044484  }
 0x2d0   : > { %v1901_v41 = vsel %vm992_vm3, %v1885_v44, %v3478_v43 }
 0x2d2   : > { %2111 = vmatmul.f32.gmra.mxu1 %v1983_v58 }
 0x2d3   : > { %2563 = vperm.xlu1 %3508, %v2157_v17   ;;  %3510 = vset.pattern.permute.xlu0 %v3599_v61  ;;  %v3497_v0 = vpop.permute.xlu2 %3496  ;;  %v2165_v14 = vpop.f32.mrf.mxu2 }
 0x2d4   : > { %2554 = vperm.xlu0 %3510, %v4608_v11   ;;  %2560 = vperm.xlu2 %3509, %v2154_v60   ;;  %v1917_v11 = vsel %vm1026_vm5, %v1901_v41, %v3483_v49  ;;  %v3479_v60 = vunpack.i.h.bf16 %v3477_v23  ;;  %v3498_v28 = vunpack.i.l.bf16 %v3497_v0  ;;  %v3499_v8 = vunpack.i.h.bf16 %v3497_v0 }
 0x2d6   : > { %v1902_v45 = vsel %vm992_vm3, %v1886_v6, %v3479_v60  ;;  %vm2295_vm3 = vcmask 1046534  }
 0x2d7   : > { %v1918_v16 = vsel %vm1026_vm5, %v1902_v45, %v3484_v9 }
 0x2db   : > { %3511 = vset.pattern.permute.xlu1 %v3598_v39  ;;  %v2168_v34 = vpop.f32.mrf.mxu2  ;;  %v2224_v1 = vpop.permute.xlu2 %2223 }
 0x2dc   : > { %2566 = vperm.xlu2 %3509, %v2160_v33   ;;  %v3492_v3 = vpop.permute.xlu1 %3491  ;;  %v2270_v56 = vperm.slane %v2224_v1, %v4694_v36 }
 0x2dd   : > { %v3487_v48 = vpop.permute.xlu0 %3486  ;;  %v3493_v62 = vunpack.i.l.bf16 %v3492_v3  ;;  %v3494_v15 = vunpack.i.h.bf16 %v3492_v3 }
 0x2de   : > { %v3488_v52 = vunpack.i.l.bf16 %v3487_v48  ;;  %v3489_v4 = vunpack.i.h.bf16 %v3487_v48 }
 0x2e0   : > { %v1933_v57 = vsel %vm1060_vm7, %v1917_v11, %v3488_v52  ;;  %v1934_v63 = vsel %vm1060_vm7, %v1918_v16, %v3489_v4 }
 0x2e1   : > { %v1950_v37 = vsel %vm1935_vm10, %v1933_v57, %v3493_v62  ;;  %v1951_v10 = vsel %vm1935_vm10, %v1934_v63, %v3494_v15 }
 0x2e2   : > { %v1967_v47 = vsel %vm1952_vm11, %v1950_v37, %v3498_v28  ;;  %v1968_v40 = vsel %vm1952_vm11, %v1951_v10, %v3499_v8 }
 0x2e3   : > { %v2171_v33 = vpop.f32.mrf.mxu2 }
 0x2e4   : > { %3512 = vset.pattern.permute.xlu2 %v3598_v39 }
 0x2e5   : > { %v3502_v5 = vpop.permute.xlu0 %3501 }
 0x2e6   : > { %v3503_v31 = vunpack.i.l.bf16 %v3502_v5  ;;  %v3504_v18 = vunpack.i.h.bf16 %v3502_v5 }
 0x2e8   : > { %v1984_v17 = vsel %vm1969_vm12, %v1967_v47, %v3503_v31  ;;  %v1985_v20 = vsel %vm1969_vm12, %v1968_v40, %v3504_v18 }
 0x2e9   : > { %2114 = vmatmul.f32.gmra.mxu1 %v1984_v17 }
 0x2eb   : > { %v2174_v6 = vpop.f32.mrf.mxu2 }
 0x2f1   : > { %2117 = vmatmul.f32.gmra.mxu1 %v1985_v20 }
 0x2f3   : > { %v2177_v4 = vpop.f32.mrf.mxu2 }
 0x2f4   : > { %v2097_v54 = vpop.f32.mrf.mxu1 }
 0x2f5   : > { %v2098_v42 = vadd.f32 %v4590_v50, %v2097_v54 }
 0x2f7   : > { %v2163_v19 = vadd.f32 %v2162_v25, %v2098_v42 }
 0x2f9   : > { %2244 = vperm.xlu1 %3511, %v2163_v19   ;;  %2569 = vperm.xlu0 %3510, %v2163_v19  }
 0x2fb   : > { %v2227_v38 = vpop.permute.xlu0 %2226  ;;  %v2180_v9 = vpop.f32.mrf.mxu2 }
 0x2fc   : > { %v2100_v24 = vpop.f32.mrf.mxu1  ;;  %v2271_v13 = vperm.slane %v2227_v38, %v4694_v36 }
 0x2fd   : > { %v2101_v51 = vadd.f32 %v4590_v50, %v2100_v24  ;;  %v4723_v24 = vld [vmem:[%s5086_s5] sm:$0xff] }
 0x2fe   : > { %v2233_v7 = vpop.permute.xlu2 %2232 }
 0x2ff   : > { %v2166_v26 = vadd.f32 %v2165_v14, %v2101_v51  ;;  %v2273_v41 = vperm.slane %v2233_v7, %v4694_v36 }
 0x301   : > { %3513 = vset.pattern.permute.xlu1 %v3599_v61  ;;  %2247 = vperm.xlu2 %3512, %v2166_v26  }
 0x302   : > { %2572 = vperm.xlu1 %3513, %v2166_v26   ;;  %3514 = vset.pattern.permute.xlu0 %v3598_v39 }
 0x303   : > { %v2230_v2 = vpop.permute.xlu1 %2229 }
 0x304   : > { %v2272_v53 = vperm.slane %v2230_v2, %v4694_v36 }
 0x30a   : > { %3515 = vset.pattern.permute.xlu1 %v3598_v39 }
 0x31c   : > { %v2221_v12 = vpop.permute.xlu1 %2220  ;;  %v2239_v3 = vpop.permute.xlu2 %2238 }
 0x31d   : > { %v2269_v46 = vperm.slane %v2221_v12, %v4694_v36  ;;  %v2275_v52 = vperm.slane %v2239_v3, %v4694_v36 }
 0x31f   : > { %v2103_v21 = vpop.f32.mrf.mxu1  ;;  %v2286_v58 = vsel %vm2285_vm13, %v2270_v56, %v2269_v46 }
 0x320   : > { %v2104_v29 = vadd.f32 %v4590_v50, %v2103_v21  ;;  %v2288_v23 = vsel %vm2287_vm14, %v2271_v13, %v2286_v58  ;;  %v4732_v21 = vld [vmem:[%s5086_s5 + $0x8] sm:$0xff] }
 0x321   : > { %v2290_v44 = vsel %vm2289_vm15, %v2272_v53, %v2288_v23 }
 0x322   : > { %v4690_v22 = vadd.f32 %v2168_v34, %v2104_v29  ;;  %v2292_v48 = vsel %vm2291_vm1, %v2273_v41, %v2290_v44 }
 0x324   : > { %2250 = vperm.xlu0 %3514, %v4690_v22   ;;  %v2236_v55 = vpop.permute.xlu1 %2235 }
 0x325   : > { %v2274_v43 = vperm.slane %v2236_v55, %v4694_v36  ;;  %v2183_v17 = vpop.f32.mrf.mxu2 }
 0x326   : > { %v2549_v40 = vpop.permute.xlu2 %2548 }
 0x327   : > { %v2106_v30 = vpop.f32.mrf.mxu1  ;;  %v2294_v49 = vsel %vm2293_vm2, %v2274_v43, %v2292_v48 }
 0x328   : > { %v2107_v39 = vadd.f32 %v4590_v50, %v2106_v30  ;;  %v2296_v11 = vsel %vm2295_vm3, %v2275_v52, %v2294_v49 }
 0x32a   : > { %v2172_v35 = vadd.f32 %v2171_v33, %v2107_v39 }
 0x32c   : > { %2253 = vperm.xlu1 %3515, %v2172_v35  }
 0x32d   : > { %v2546_v10 = vpop.permute.xlu1 %2545 }
 0x32e   : > { %v2561_v54 = vpop.permute.xlu2 %2560  ;;  %v2592_v26 = vperm.slane %v2546_v10, %v4694_v36 }
 0x32f   : > { %v2597_v56 = vperm.slane %v2561_v54, %v4694_v36 }
 0x334   : > { %3518 = vset.pattern.permute.xlu1 %v3599_v61 }
 0x335   : > { %v2552_v8 = vpop.permute.xlu1 %2551 }
 0x336   : > { %v2594_v29 = vperm.slane %v2552_v8, %v4694_v36 }
 0x33d   : > { %v2242_v59 = vpop.permute.xlu0 %2241  ;;  %v2558_v20 = vpop.permute.xlu1 %2557 }
 0x33e   : > { %v2276_v62 = vperm.slane %v2242_v59, %v4694_v36  ;;  %v2596_v1 = vperm.slane %v2558_v20, %v4694_v36 }
 0x340   : > { %v2298_v60 = vsel %vm2297_vm4, %v2276_v62, %v2296_v11 }
 0x341   : > { %3027 = vmatmul.msk.f32.vlgmr.msra.gmra.mxu3 %vm941_vm0, %v2298_v60 }
 0x345   : > { %v2564_v42 = vpop.permute.xlu1 %2563 }
 0x346   : > { %v2555_v25 = vpop.permute.xlu0 %2554  ;;  %v2598_v55 = vperm.slane %v2564_v42, %v4694_v36 }
 0x347   : > { %v2109_v57 = vpop.f32.mrf.mxu1  ;;  %v2595_v2 = vperm.slane %v2555_v25, %v4694_v36 }
 0x348   : > { %v2110_v0 = vadd.f32 %v4590_v50, %v2109_v57 }
 0x34a   : > { %v2175_v37 = vadd.f32 %v2174_v6, %v2110_v0 }
 0x34c   : > { %2581 = vperm.xlu1 %3518, %v2175_v37   ;;  %2256 = vperm.xlu2 %3512, %v2175_v37  }
 0x34f   : > { %v2112_v28 = vpop.f32.mrf.mxu1 }
 0x350   : > { %v2113_v45 = vadd.f32 %v4590_v50, %v2112_v28 }
 0x352   : > { %v2178_v5 = vadd.f32 %v2177_v4, %v2113_v45 }
 0x354   : > { %2259 = vperm.xlu0 %3514, %v2178_v5  }
 0x366   : > { %v2115_v31 = vpop.f32.mrf.mxu1 }
 0x367   : > { %v2116_v47 = vadd.f32 %v4590_v50, %v2115_v31 }
 0x369   : > { %v2181_v15 = vadd.f32 %v2180_v9, %v2116_v47 }
 0x36b   : > { %2262 = vperm.xlu0 %3514, %v2181_v15   ;;  %v2245_v19 = vpop.permute.xlu1 %2244  ;;  %v2570_v51 = vpop.permute.xlu0 %2569 }
 0x36c   : > { %v2277_v7 = vperm.slane %v2245_v19, %v4694_v36  ;;  %v2600_v31 = vperm.slane %v2570_v51, %v4694_v36 }
 0x36e   : > { %v2118_v16 = vpop.f32.mrf.mxu1 }
 0x36f   : > { %v2119_v63 = vadd.f32 %v4590_v50, %v2118_v16  ;;  %v2567_v50 = vpop.permute.xlu2 %2566  ;;  %v4781_v16 = vld [vmem:[%s5086_s5 + $0x18] sm:$0xff] }
 0x370   : > { %v2599_v49 = vperm.slane %v2567_v50, %v4694_v36  ;;  %v4795_v50 = vld [vmem:[%s5086_s5 + $0x20] sm:$0xff] }
 0x371   : > { %v2184_v18 = vadd.f32 %v2183_v17, %v2119_v63 }
 0x373   : > { %2590 = vperm.xlu1 %3518, %v2184_v18   ;;  %3517 = vset.pattern.permute.xlu0 %v3599_v61 }
 0x374   : > { %2265 = vperm.xlu2 %3512, %v2184_v18   ;;  %2578 = vperm.xlu0 %3517, %v2172_v35   ;;  %v2573_v30 = vpop.permute.xlu1 %2572  ;;  %v4746_v35 = vld [vmem:[%s5086_s5 + $0x10] sm:$0xff] }
 0x375   : > { %v2601_v4 = vperm.slane %v2573_v30, %v4694_v36  ;;  %v4849_v30 = vld [vmem:[%s5086_s5 + $0x58] sm:$0xff] }
 0x377   : > { %v2248_v14 = vpop.permute.xlu2 %2247  ;;  %v2615_v17 = vsel %vm2285_vm13, %v2601_v4, %v2600_v31 }
 0x378   : > { %v2278_v53 = vperm.slane %v2248_v14, %v4694_v36 }
 0x37a   : > { %v2299_v41 = vsel %vm2285_vm13, %v2278_v53, %v2277_v7 }
 0x37c   : > { %3516 = vset.pattern.permute.xlu2 %v3599_v61  ;;  %2587 = vperm.xlu0 %3517, %v2181_v15  }
 0x37d   : > { %2575 = vperm.xlu2 %3516, %v4690_v22   ;;  %v2593_v22 = vperm.slane %v2549_v40, %v4694_v36 }
 0x385   : > { %2584 = vperm.xlu2 %3516, %v2178_v5  }
 0x396   : > { %v2251_v34 = vpop.permute.xlu0 %2250 }
 0x397   : > { %v2279_v23 = vperm.slane %v2251_v34, %v4694_v36  ;;  %v4828_v34 = vld [vmem:[%s5086_s5 + $0x40] sm:$0xff] }
 0x399   : > { %v2300_v52 = vsel %vm2287_vm14, %v2279_v23, %v2299_v41 }
 0x39e   : > { %v2254_v38 = vpop.permute.xlu1 %2253 }
 0x39f   : > { %v2280_v43 = vperm.slane %v2254_v38, %v4694_v36 }
 0x3a1   : > { %v2301_v59 = vsel %vm2289_vm15, %v2280_v43, %v2300_v52 }
 0x3a6   : > { %v2257_v32 = vpop.permute.xlu2 %2256 }
 0x3a7   : > { %v2281_v44 = vperm.slane %v2257_v32, %v4694_v36  ;;  %v4856_v32 = vld [vmem:[%s5086_s5 + $0x60] sm:$0xff] }
 0x3a9   : > { %v2302_v11 = vsel %vm2291_vm1, %v2281_v44, %v2301_v59 }
 0x3be   : > { %v2582_v5 = vpop.permute.xlu1 %2581 }
 0x3bf   : > { %v2604_v10 = vperm.slane %v2582_v5, %v4694_v36 }
 0x3c4   : > { %v2327_v61 = vpop.f32.mrf.mxu3 }
 0x3c5   : > { %2396 = vmatpush.msrb.mxu0 %v2327_v61  ;;  %3169 = vmatpush.msrb.mxu3 %v2327_v61 }
 0x3c6   : > { %3029 = vmatmul.msk.f32.vlgmr.msrb.gmra.mxu0 %vm941_vm0, %v4723_v24  ;;  %v2260_v46 = vpop.permute.xlu0 %2259 }
 0x3c7   : > { %2641 = vmatpush.msra.mxu0 %v4686_v27  ;;  %v2608_v27 = vsel %vm2285_vm13, %v2593_v22, %v2592_v26  ;;  %v2282_v3 = vperm.slane %v2260_v46, %v4694_v36  ;;  %v4807_v26 = vld [vmem:[%s5086_s5 + $0x28] sm:$0xff] }
 0x3c8   : > { %v2609_v39 = vsel %vm2287_vm14, %v2594_v29, %v2608_v27  ;;  %v4821_v29 = vld [vmem:[%s5086_s5 + $0x38] sm:$0xff]  ;;  %v4835_v22 = vld [vmem:[%s5086_s5 + $0x48] sm:$0xff] }
 0x3c9   : > { %v2610_v33 = vsel %vm2289_vm15, %v2595_v2, %v2609_v39  ;;  %v2303_v0 = vsel %vm2293_vm2, %v2282_v3, %v2302_v11  ;;  %v4842_v2 = vld [vmem:[%s5086_s5 + $0x50] sm:$0xff]  ;;  %v4863_v27 = vld [vmem:[%s5086_s5 + $0x68] sm:$0xff] }
 0x3ca   : > { %v2611_v12 = vsel %vm2291_vm1, %v2596_v1, %v2610_v33  ;;  %v4873_v39 = vld [vmem:[%s5086_s5 + $0x70] sm:$0xff]  ;;  %v4883_v1 = vld [vmem:[%s5086_s5 + $0x78] sm:$0xff] }
 0x3cb   : > { %v2612_v13 = vsel %vm2293_vm2, %v2597_v56, %v2611_v12 }
 0x3cc   : > { %v2613_v48 = vsel %vm2295_vm3, %v2598_v55, %v2612_v13 }
 0x3cd   : > { %v2614_v57 = vsel %vm2297_vm4, %v2599_v49, %v2613_v48 }
 0x3ce   : > { %3030 = vmatmul.msk.f32.gmra.mxu0 %vm941_vm0, %v4732_v21  ;;  %v2266_v58 = vpop.permute.xlu2 %2265 }
 0x3cf   : > { %v2284_v6 = vperm.slane %v2266_v58, %v4694_v36 }
 0x3d6   : > { %3031 = vmatmul.msk.f32.gmra.mxu0 %vm941_vm0, %v4746_v35 }
 0x3d7   : > { %v2576_v28 = vpop.permute.xlu2 %2575 }
 0x3d8   : > { %v2602_v9 = vperm.slane %v2576_v28, %v4694_v36 }
 0x3da   : > { %v2616_v63 = vsel %vm2287_vm14, %v2602_v9, %v2615_v17 }
 0x3dd   : > { %v2263_v62 = vpop.permute.xlu0 %2262 }
 0x3de   : > { %v2283_v60 = vperm.slane %v2263_v62, %v4694_v36  ;;  %3077 = vmatmul.msk.f32.vlgmr.msra.gmra.mxu0 %vm941_vm0, %v2614_v57 }
 0x3df   : > { %v2585_v8 = vpop.permute.xlu2 %2584 }
 0x3e0   : > { %v2304_v37 = vsel %vm2295_vm3, %v2283_v60, %v2303_v0  ;;  %v2605_v54 = vperm.slane %v2585_v8, %v4694_v36 }
 0x3e1   : > { %v2305_v45 = vsel %vm2297_vm4, %v2284_v6, %v2304_v37 }
 0x3e2   : > { %3028 = vmatmul.msk.f32.gmra.mxu3 %vm941_vm0, %v2305_v45 }
 0x3e5   : > { %v2591_v40 = vpop.permute.xlu1 %2590 }
 0x3e6   : > { %v2579_v47 = vpop.permute.xlu0 %2578  ;;  %v2607_v19 = vperm.slane %v2591_v40, %v4694_v36 }
 0x3e7   : > { %v2603_v15 = vperm.slane %v2579_v47, %v4694_v36 }
 0x3e9   : > { %v2617_v18 = vsel %vm2289_vm15, %v2603_v15, %v2616_v63 }
 0x3ea   : > { %3032 = vmatmul.msk.f32.vlgmr.msrb.gmra.mxu3 %vm941_vm0, %v4781_v16  ;;  %v2618_v20 = vsel %vm2291_vm1, %v2604_v10, %v2617_v18 }
 0x3eb   : > { %v2619_v51 = vsel %vm2293_vm2, %v2605_v54, %v2618_v20 }
 0x3ee   : > { %v2588_v42 = vpop.permute.xlu0 %2587 }
 0x3ef   : > { %v2606_v25 = vperm.slane %v2588_v42, %v4694_v36  ;;  %v4814_v36 = vld [vmem:[%s5086_s5 + $0x30] sm:$0xff] }
 0x3f1   : > { %v2620_v61 = vsel %vm2295_vm3, %v2606_v25, %v2619_v51 }
 0x3f2   : > { %v2621_v14 = vsel %vm2297_vm4, %v2607_v19, %v2620_v61  ;;  %3033 = vmatmul.msk.f32.gmra.mxu3 %vm941_vm0, %v4795_v50 }
 0x3f3   : > { %3078 = vmatmul.msk.f32.gmra.mxu0 %vm941_vm0, %v2621_v14 }
 0x3fa   : > { %3034 = vmatmul.msk.f32.gmra.mxu3 %vm941_vm0, %v4807_v26 }
 0x402   : > { %3035 = vmatmul.msk.f32.gmra.mxu3 %vm941_vm0, %v4814_v36 }
 0x40a   : > { %3036 = vmatmul.msk.f32.gmra.mxu3 %vm941_vm0, %v4821_v29 }
 0x412   : > { %3037 = vmatmul.msk.f32.gmra.mxu3 %vm941_vm0, %v4828_v34 }
 0x41a   : > { %3038 = vmatmul.msk.f32.gmra.mxu3 %vm941_vm0, %v4835_v22 }
 0x422   : > { %3039 = vmatmul.msk.f32.gmra.mxu3 %vm941_vm0, %v4842_v2 }
 0x42a   : > { %3040 = vmatmul.msk.f32.gmra.mxu3 %vm941_vm0, %v4849_v30 }
 0x432   : > { %3041 = vmatmul.msk.f32.gmra.mxu3 %vm941_vm0, %v4856_v32 }
 0x43a   : > { %3042 = vmatmul.msk.f32.gmra.mxu3 %vm941_vm0, %v4863_v27 }
 0x442   : > { %3043 = vmatmul.msk.f32.gmra.mxu3 %vm941_vm0, %v4873_v39 }
 0x443   : > { %v2398_v33 = vpop.f32.mrf.mxu0 }
 0x444   : > { %2446 = vst [vmem:[%s4877_s13] sm:$0xff] %v2398_v33 }
 0x44a   : > { %3044 = vmatmul.msk.f32.gmra.mxu3 %vm941_vm0, %v4883_v1 }
 0x44b   : > { %v2401_v12 = vpop.f32.mrf.mxu0 }
 0x44c   : > { %2447 = vst [vmem:[%s4877_s13 + $0x8] sm:$0xff] %v2401_v12 }
 0x453   : > { %v2404_v46 = vpop.f32.mrf.mxu0 }
 0x454   : > { %2448 = vst [vmem:[%s4877_s13 + $0x10] sm:$0xff] %v2404_v46 }
 0x45b   : > { %v2643_v56 = vpop.f32.mrf.mxu0 }
 0x45c   : > { %2664 = vmatpush.msra.mxu3 %v2643_v56 }
 0x45d   : > { %3079 = vmatmul.msk.f32.vlgmr.msra.gmra.mxu3 %vm941_vm0, %v4723_v24 }
 0x465   : > { %v2330_v38 = vpop.f32.mrf.mxu3  ;;  %3080 = vmatmul.msk.f32.gmra.mxu3 %vm941_vm0, %v4732_v21 }
 0x466   : > { %2477 = vmatpush.msrb.mxu2 %v2330_v38 }
 0x467   : > { %3045 = vmatmul.msk.f32.vlgmr.msrb.gmra.mxu2 %vm941_vm0, %v4723_v24 }
 0x46d   : > { %v2407_v7 = vpop.f32.mrf.mxu3  ;;  %3081 = vmatmul.msk.f32.gmra.mxu3 %vm941_vm0, %v4746_v35 }
 0x46e   : > { %2449 = vst [vmem:[%s4877_s13 + $0x18] sm:$0xff] %v2407_v7 }
 0x46f   : > { %3046 = vmatmul.msk.f32.gmra.mxu2 %vm941_vm0, %v4732_v21 }
 0x470   : > { %v2646_v58 = vpop.f32.mrf.mxu0 }
 0x471   : > { %2746 = vmatpush.msrb.mxu1 %v2646_v58 }
 0x472   : > { %3111 = vmatmul.msk.f32.vlgmr.msrb.gmra.mxu1 %vm941_vm0, %v4723_v24 }
 0x475   : > { %v2410_v13 = vpop.f32.mrf.mxu3  ;;  %3082 = vmatmul.msk.f32.gmra.mxu3 %vm941_vm0, %v4781_v16 }
 0x476   : > { %2450 = vst [vmem:[%s4877_s13 + $0x20] sm:$0xff] %v2410_v13 }
 0x477   : > { %3047 = vmatmul.msk.f32.gmra.mxu2 %vm941_vm0, %v4746_v35 }
 0x47a   : > { %3112 = vmatmul.msk.f32.gmra.mxu1 %vm941_vm0, %v4732_v21 }
 0x47d   : > { %v2413_v23 = vpop.f32.mrf.mxu3  ;;  %3083 = vmatmul.msk.f32.gmra.mxu3 %vm941_vm0, %v4795_v50 }
 0x47e   : > { %2451 = vst [vmem:[%s4877_s13 + $0x28] sm:$0xff] %v2413_v23 }
 0x47f   : > { %3048 = vmatmul.msk.f32.gmra.mxu2 %vm941_vm0, %v4781_v16 }
 0x482   : > { %3113 = vmatmul.msk.f32.gmra.mxu1 %vm941_vm0, %v4746_v35 }
 0x485   : > { %v2416_v24 = vpop.f32.mrf.mxu3  ;;  %3084 = vmatmul.msk.f32.gmra.mxu3 %vm941_vm0, %v4807_v26 }
 0x486   : > { %2452 = vst [vmem:[%s4877_s13 + $0x30] sm:$0xff] %v2416_v24 }
 0x487   : > { %3049 = vmatmul.msk.f32.gmra.mxu2 %vm941_vm0, %v4795_v50 }
 0x48a   : > { %3114 = vmatmul.msk.f32.gmra.mxu1 %vm941_vm0, %v4781_v16 }
 0x48d   : > { %v2419_v21 = vpop.f32.mrf.mxu3  ;;  %3085 = vmatmul.msk.f32.gmra.mxu3 %vm941_vm0, %v4814_v36 }
 0x48e   : > { %2453 = vst [vmem:[%s4877_s13 + $0x38] sm:$0xff] %v2419_v21 }
 0x48f   : > { %3050 = vmatmul.msk.f32.gmra.mxu2 %vm941_vm0, %v4807_v26 }
 0x492   : > { %3115 = vmatmul.msk.f32.gmra.mxu1 %vm941_vm0, %v4795_v50 }
 0x495   : > { %v2422_v35 = vpop.f32.mrf.mxu3  ;;  %3086 = vmatmul.msk.f32.gmra.mxu3 %vm941_vm0, %v4821_v29 }
 0x496   : > { %2454 = vst [vmem:[%s4877_s13 + $0x40] sm:$0xff] %v2422_v35 }
 0x497   : > { %3051 = vmatmul.msk.f32.gmra.mxu2 %vm941_vm0, %v4814_v36 }
 0x49a   : > { %3116 = vmatmul.msk.f32.gmra.mxu1 %vm941_vm0, %v4807_v26 }
 0x49d   : > { %v2425_v55 = vpop.f32.mrf.mxu3  ;;  %3087 = vmatmul.msk.f32.gmra.mxu3 %vm941_vm0, %v4828_v34 }
 0x49e   : > { %2455 = vst [vmem:[%s4877_s13 + $0x48] sm:$0xff] %v2425_v55 }
 0x49f   : > { %3052 = vmatmul.msk.f32.gmra.mxu2 %vm941_vm0, %v4821_v29 }
 0x4a2   : > { %3117 = vmatmul.msk.f32.gmra.mxu1 %vm941_vm0, %v4814_v36 }
 0x4a5   : > { %v2428_v53 = vpop.f32.mrf.mxu3  ;;  %3088 = vmatmul.msk.f32.gmra.mxu3 %vm941_vm0, %v4835_v22 }
 0x4a6   : > { %2456 = vst [vmem:[%s4877_s13 + $0x50] sm:$0xff] %v2428_v53 }
 0x4a7   : > { %3053 = vmatmul.msk.f32.gmra.mxu2 %vm941_vm0, %v4828_v34 }
 0x4aa   : > { %3118 = vmatmul.msk.f32.gmra.mxu1 %vm941_vm0, %v4821_v29 }
 0x4ad   : > { %v2431_v43 = vpop.f32.mrf.mxu3  ;;  %3089 = vmatmul.msk.f32.gmra.mxu3 %vm941_vm0, %v4842_v2 }
 0x4ae   : > { %2457 = vst [vmem:[%s4877_s13 + $0x58] sm:$0xff] %v2431_v43 }
 0x4af   : > { %3054 = vmatmul.msk.f32.gmra.mxu2 %vm941_vm0, %v4835_v22 }
 0x4b2   : > { %3119 = vmatmul.msk.f32.gmra.mxu1 %vm941_vm0, %v4828_v34 }
 0x4b5   : > { %v2434_v44 = vpop.f32.mrf.mxu3  ;;  %3090 = vmatmul.msk.f32.gmra.mxu3 %vm941_vm0, %v4849_v30 }
 0x4b6   : > { %2458 = vst [vmem:[%s4877_s13 + $0x60] sm:$0xff] %v2434_v44 }
 0x4b7   : > { %3055 = vmatmul.msk.f32.gmra.mxu2 %vm941_vm0, %v4842_v2 }
 0x4ba   : > { %3120 = vmatmul.msk.f32.gmra.mxu1 %vm941_vm0, %v4835_v22 }
 0x4bd   : > { %v2437_v41 = vpop.f32.mrf.mxu3  ;;  %3091 = vmatmul.msk.f32.gmra.mxu3 %vm941_vm0, %v4856_v32 }
 0x4be   : > { %2459 = vst [vmem:[%s4877_s13 + $0x68] sm:$0xff] %v2437_v41 }
 0x4bf   : > { %3056 = vmatmul.msk.f32.gmra.mxu2 %vm941_vm0, %v4849_v30 }
 0x4c2   : > { %3121 = vmatmul.msk.f32.gmra.mxu1 %vm941_vm0, %v4842_v2 }
 0x4c5   : > { %v2440_v3 = vpop.f32.mrf.mxu3  ;;  %3092 = vmatmul.msk.f32.gmra.mxu3 %vm941_vm0, %v4863_v27 }
 0x4c6   : > { %2460 = vst [vmem:[%s4877_s13 + $0x70] sm:$0xff] %v2440_v3 }
 0x4c7   : > { %3057 = vmatmul.msk.f32.gmra.mxu2 %vm941_vm0, %v4856_v32 }
 0x4ca   : > { %3122 = vmatmul.msk.f32.gmra.mxu1 %vm941_vm0, %v4849_v30 }
 0x4cd   : > { %v2443_v48 = vpop.f32.mrf.mxu3  ;;  %3093 = vmatmul.msk.f32.gmra.mxu3 %vm941_vm0, %v4873_v39 }
 0x4ce   : > { %2461 = vst [vmem:[%s4877_s13 + $0x78] sm:$0xff] %v2443_v48 }
 0x4cf   : > { %3058 = vmatmul.msk.f32.gmra.mxu2 %vm941_vm0, %v4863_v27 }
 0x4d2   : > { %3123 = vmatmul.msk.f32.gmra.mxu1 %vm941_vm0, %v4856_v32 }
 0x4d5   : > { %3094 = vmatmul.msk.f32.gmra.mxu3 %vm941_vm0, %v4883_v1 }
 0x4d7   : > { %3059 = vmatmul.msk.f32.gmra.mxu2 %vm941_vm0, %v4873_v39 }
 0x4da   : > { %3124 = vmatmul.msk.f32.gmra.mxu1 %vm941_vm0, %v4863_v27 }
 0x4df   : > { %3060 = vmatmul.msk.f32.gmra.mxu2 %vm941_vm0, %v4883_v1 }
 0x4e0   : > { %v2666_v49 = vpop.f32.mrf.mxu3 }
 0x4e1   : > { %3095 = vst [vmem:[%s4877_s13 + $0x80] sm:$0xff] %v2666_v49 }
 0x4e2   : > { %3125 = vmatmul.msk.f32.gmra.mxu1 %vm941_vm0, %v4873_v39 }
 0x4e8   : > { %v2669_v52 = vpop.f32.mrf.mxu3 }
 0x4e9   : > { %3096 = vst [vmem:[%s4877_s13 + $0x88] sm:$0xff] %v2669_v52 }
 0x4ea   : > { %3126 = vmatmul.msk.f32.gmra.mxu1 %vm941_vm0, %v4883_v1  ;;  %v2479_v59 = vpop.f32.mrf.mxu2 }
 0x4eb   : > { %3061 = vst [vmem:[%s4877_s13 + $0x100] sm:$0xff] %v2479_v59 }
 0x4ef   : > { %v2748_v62 = vpop.f32.mrf.mxu1 }
 0x4f0   : > { %3127 = vst [vmem:[%s4877_s13 + $0x180] sm:$0xff] %v2748_v62  ;;  %v2672_v11 = vpop.f32.mrf.mxu3 }
 0x4f1   : > { %3097 = vst [vmem:[%s4877_s13 + $0x90] sm:$0xff] %v2672_v11 }
 0x4f2   : > { %v2482_v60 = vpop.f32.mrf.mxu2 }
 0x4f3   : > { %3062 = vst [vmem:[%s4877_s13 + $0x108] sm:$0xff] %v2482_v60 }
 0x4f7   : > { %v2751_v57 = vpop.f32.mrf.mxu1 }
 0x4f8   : > { %3128 = vst [vmem:[%s4877_s13 + $0x188] sm:$0xff] %v2751_v57  ;;  %v2675_v0 = vpop.f32.mrf.mxu3 }
 0x4f9   : > { %3098 = vst [vmem:[%s4877_s13 + $0x98] sm:$0xff] %v2675_v0 }
 0x4fa   : > { %v2485_v6 = vpop.f32.mrf.mxu2 }
 0x4fb   : > { %3063 = vst [vmem:[%s4877_s13 + $0x110] sm:$0xff] %v2485_v6 }
 0x4ff   : > { %v2754_v37 = vpop.f32.mrf.mxu1 }
 0x500   : > { %3129 = vst [vmem:[%s4877_s13 + $0x190] sm:$0xff] %v2754_v37  ;;  %v2678_v28 = vpop.f32.mrf.mxu3 }
 0x501   : > { %3099 = vst [vmem:[%s4877_s13 + $0xa0] sm:$0xff] %v2678_v28 }
 0x502   : > { %v2488_v45 = vpop.f32.mrf.mxu2 }
 0x503   : > { %3064 = vst [vmem:[%s4877_s13 + $0x118] sm:$0xff] %v2488_v45 }
 0x507   : > { %v2757_v4 = vpop.f32.mrf.mxu1 }
 0x508   : > { %3130 = vst [vmem:[%s4877_s13 + $0x198] sm:$0xff] %v2757_v4  ;;  %v2681_v5 = vpop.f32.mrf.mxu3 }
 0x509   : > { %3100 = vst [vmem:[%s4877_s13 + $0xa8] sm:$0xff] %v2681_v5 }
 0x50a   : > { %v2491_v9 = vpop.f32.mrf.mxu2 }
 0x50b   : > { %3065 = vst [vmem:[%s4877_s13 + $0x120] sm:$0xff] %v2491_v9 }
 0x50f   : > { %v2760_v31 = vpop.f32.mrf.mxu1 }
 0x510   : > { %3131 = vst [vmem:[%s4877_s13 + $0x1a0] sm:$0xff] %v2760_v31  ;;  %v2684_v47 = vpop.f32.mrf.mxu3 }
 0x511   : > { %3101 = vst [vmem:[%s4877_s13 + $0xb0] sm:$0xff] %v2684_v47 }
 0x512   : > { %v2494_v15 = vpop.f32.mrf.mxu2 }
 0x513   : > { %3066 = vst [vmem:[%s4877_s13 + $0x128] sm:$0xff] %v2494_v15 }
 0x517   : > { %v2763_v16 = vpop.f32.mrf.mxu1 }
 0x518   : > { %3132 = vst [vmem:[%s4877_s13 + $0x1a8] sm:$0xff] %v2763_v16  ;;  %v2687_v17 = vpop.f32.mrf.mxu3 }
 0x519   : > { %3102 = vst [vmem:[%s4877_s13 + $0xb8] sm:$0xff] %v2687_v17 }
 0x51a   : > { %v2497_v63 = vpop.f32.mrf.mxu2 }
 0x51b   : > { %3067 = vst [vmem:[%s4877_s13 + $0x130] sm:$0xff] %v2497_v63 }
 0x51f   : > { %v2766_v18 = vpop.f32.mrf.mxu1 }
 0x520   : > { %3133 = vst [vmem:[%s4877_s13 + $0x1b0] sm:$0xff] %v2766_v18  ;;  %v2690_v10 = vpop.f32.mrf.mxu3 }
 0x521   : > { %3103 = vst [vmem:[%s4877_s13 + $0xc0] sm:$0xff] %v2690_v10 }
 0x522   : > { %v2500_v8 = vpop.f32.mrf.mxu2 }
 0x523   : > { %3068 = vst [vmem:[%s4877_s13 + $0x138] sm:$0xff] %v2500_v8 }
 0x527   : > { %v2769_v40 = vpop.f32.mrf.mxu1 }
 0x528   : > { %3134 = vst [vmem:[%s4877_s13 + $0x1b8] sm:$0xff] %v2769_v40  ;;  %v2693_v20 = vpop.f32.mrf.mxu3 }
 0x529   : > { %3104 = vst [vmem:[%s4877_s13 + $0xc8] sm:$0xff] %v2693_v20 }
 0x52a   : > { %v2503_v54 = vpop.f32.mrf.mxu2 }
 0x52b   : > { %3069 = vst [vmem:[%s4877_s13 + $0x140] sm:$0xff] %v2503_v54 }
 0x52f   : > { %v2772_v42 = vpop.f32.mrf.mxu1 }
 0x530   : > { %3135 = vst [vmem:[%s4877_s13 + $0x1c0] sm:$0xff] %v2772_v42  ;;  %v2696_v25 = vpop.f32.mrf.mxu3 }
 0x531   : > { %3105 = vst [vmem:[%s4877_s13 + $0xd0] sm:$0xff] %v2696_v25 }
 0x532   : > { %v2506_v50 = vpop.f32.mrf.mxu2 }
 0x533   : > { %3070 = vst [vmem:[%s4877_s13 + $0x148] sm:$0xff] %v2506_v50 }
 0x537   : > { %v2775_v19 = vpop.f32.mrf.mxu1 }
 0x538   : > { %3136 = vst [vmem:[%s4877_s13 + $0x1c8] sm:$0xff] %v2775_v19  ;;  %v2699_v51 = vpop.f32.mrf.mxu3 }
 0x539   : > { %3106 = vst [vmem:[%s4877_s13 + $0xd8] sm:$0xff] %v2699_v51 }
 0x53a   : > { %v2509_v61 = vpop.f32.mrf.mxu2 }
 0x53b   : > { %3071 = vst [vmem:[%s4877_s13 + $0x150] sm:$0xff] %v2509_v61 }
 0x53f   : > { %v2778_v14 = vpop.f32.mrf.mxu1 }
 0x540   : > { %3137 = vst [vmem:[%s4877_s13 + $0x1d0] sm:$0xff] %v2778_v14  ;;  %v2702_v26 = vpop.f32.mrf.mxu3 }
 0x541   : > { %3107 = vst [vmem:[%s4877_s13 + $0xe0] sm:$0xff] %v2702_v26 }
 0x542   : > { %v2512_v36 = vpop.f32.mrf.mxu2 }
 0x543   : > { %3072 = vst [vmem:[%s4877_s13 + $0x158] sm:$0xff] %v2512_v36 }
 0x547   : > { %v2781_v29 = vpop.f32.mrf.mxu1 }
 0x548   : > { %3138 = vst [vmem:[%s4877_s13 + $0x1d8] sm:$0xff] %v2781_v29  ;;  %v2705_v34 = vpop.f32.mrf.mxu3 }
 0x549   : > { %3108 = vst [vmem:[%s4877_s13 + $0xe8] sm:$0xff] %v2705_v34 }
 0x54a   : > { %v2515_v22 = vpop.f32.mrf.mxu2 }
 0x54b   : > { %3073 = vst [vmem:[%s4877_s13 + $0x160] sm:$0xff] %v2515_v22 }
 0x54f   : > { %v2784_v2 = vpop.f32.mrf.mxu1 }
 0x550   : > { %3139 = vst [vmem:[%s4877_s13 + $0x1e0] sm:$0xff] %v2784_v2  ;;  %v2708_v30 = vpop.f32.mrf.mxu3 }
 0x551   : > { %3109 = vst [vmem:[%s4877_s13 + $0xf0] sm:$0xff] %v2708_v30 }
 0x552   : > { %v2518_v32 = vpop.f32.mrf.mxu2 }
 0x553   : > { %3074 = vst [vmem:[%s4877_s13 + $0x168] sm:$0xff] %v2518_v32 }
 0x557   : > { %v2787_v27 = vpop.f32.mrf.mxu1 }
 0x558   : > { %3140 = vst [vmem:[%s4877_s13 + $0x1e8] sm:$0xff] %v2787_v27  ;;  %v2711_v39 = vpop.f32.mrf.mxu3 }
 0x559   : > { %3110 = vst [vmem:[%s4877_s13 + $0xf8] sm:$0xff] %v2711_v39 }
 0x55a   : > { %v2521_v33 = vpop.f32.mrf.mxu2 }
 0x55b   : > { %3075 = vst [vmem:[%s4877_s13 + $0x170] sm:$0xff] %v2521_v33 }
 0x55f   : > { %v2790_v1 = vpop.f32.mrf.mxu1 }
 0x560   : > { %3141 = vst [vmem:[%s4877_s13 + $0x1f0] sm:$0xff] %v2790_v1 }
 0x562   : > { %v2524_v12 = vpop.f32.mrf.mxu2 }
 0x563   : > { %3076 = vst [vmem:[%s4877_s13 + $0x178] sm:$0xff] %v2524_v12 }
 0x567   : > { %v2793_v46 = vpop.f32.mrf.mxu1 }
 0x568   : > { %3142 = vst [vmem:[%s4877_s13 + $0x1f8] sm:$0xff] %v2793_v46 }
 0x569   : > { %3549 = shalt.err (!%p3546_p3)
}
 0x56a   : > { %s3600_s9 = smov 128  }
 0x56b   : > { %3171 = dma.vmem_to_hbm [thread:$0]  (%p3679_p5), %s2828_s17, 8192, %s2830_s8, %s2814_s19, %s3600_s9, %s3600_s9, %s3588_s20  }
 0x56c PF: > { %p3177_p4 = scmp.ge.s32.totalorder %s3584_s27, 2  ;;  %s2844_s13 = sand.u32 1, %s3572_s24  }
 0x56d   : > { %s2845_s29 = scalar_lea.sflag [#allocation4], %s2844_s13 }
 0x56e   : > { %p3174_p7 = pnand %p3177_p4, %p3683_p6 }
 0x570   : > { %p3175_p8 = pneg %p3174_p7 }
 0x572   : > { %3567 = dma.done.wait (%p3175_p8), %s2845_s29, 8192  }
 0x573   : > { %3569 = vsyncadd (%p3175_p8), %s2845_s29, 4294959104  ;;  %p17_p9 = scmp.ge.s32.totalorder %s3666_s30, 4   ;;  %s5100_s24 = smov %s3576_s25 }
 0x574   : > { %s5101_s25 = smov %s3580_s26  ;;  %s5102_s26 = smov %s3677_s10 }
 0x575   : > { %s5103_s27 = smov %s3666_s30  ;;  %19 = sbr.rel (!%p17_p9) target bundleno = 3 (0x3), region = 90 }
 0x57a   :  { %2851 = vsyncpa [#allocation4], 1 }
 0x57b   :  { %2853 = vsyncpa [#allocation4 + $0x1], 1 }

</bundles_post_ra>
